<compile_context>
chip_gen: v5e
topology: v5e:2x2
jax: 0.10.0
libtpu: 0.0.40
codegen_flags: <defaults>
</compile_context>

<pallas_src>
import functools

import jax
import jax.numpy as jnp
import numpy as np
from jax.experimental import pallas as pl
from jax.experimental.pallas import tpu as pltpu


def _round_up(n, m):
    return (n + m - 1) // m * m


def _shift_lanes(x, g):
    """y[:, q] = x[:, q + g] (zero fill at the array ends); g is a static int.

    Lowers to a lane slice + lane concatenation (cheap data movement, no MXU).
    Out-of-range / cross-batch positions are additionally zeroed by the
    precomputed per-tap masks, so only in-range reads matter here.
    """
    if g == 0:
        return x
    c, n = x.shape
    fill = jnp.zeros((c, abs(g)), x.dtype)
    if g > 0:
        return jnp.concatenate([x[:, g:], fill], axis=1)
    return jnp.concatenate([fill, x[:, : n + g]], axis=1)


# ----------------------------------------------------------------------------
# Fused Pallas kernel: 9x (conv + bias + ReLU) -> avgpool last window -> linear
# ----------------------------------------------------------------------------
def _fused_pure1d_kernel(x_ref, slab_ref, mask_ref, pool_ref, o_ref, *,
                         metas, K, kc_max, lin_off, n_out, compute_dtype):
    """refs:
        x_ref    : (B, C_in_p, L)      channel-padded NCL input
        slab_ref : (R, kc_max + 1)     all conv weights (flattened per layer),
                                       biases (last column) and the linear layer
        mask_ref : (9*K, B*L)          per-layer/per-tap validity masks
        pool_ref : (B*L, B)            last-window AvgPool(7) matrix
        o_ref    : (n_out, B)
    """
    f32 = jnp.float32
    batch = x_ref.shape[0]

    # Pack batch onto the lane axis: (C_in_p, B*L).  128-aligned lane concat.
    act = jnp.concatenate([x_ref[b] for b in range(batch)], axis=1).astype(f32)

    for li, (row_off, c_in_p, c_out_p, shifts) in enumerate(metas):
        kc = K * c_in_p
        blk = slab_ref[pl.ds(row_off, c_out_p), :]            # (c_out_p, kc_max+1)
        w = blk[:, :kc].astype(compute_dtype)                 # (c_out_p, kc)
        bias = blk[:, kc_max:kc_max + 1]                      # (c_out_p, 1)  f32

        taps = []
        for k, g in enumerate(shifts):
            m = mask_ref[pl.ds(li * K + k, 1), :]             # (1, B*L)
            taps.append(_shift_lanes(act, g) * m)
        # 8-aligned sublane stacking -> ONE matmul for all K taps of the layer.
        stacked = jnp.concatenate(taps, axis=0).astype(compute_dtype)  # (kc, B*L)

        y = jnp.dot(w, stacked, preferred_element_type=f32)   # (c_out_p, B*L)
        act = jnp.maximum(y + bias, 0.0)                      # fused bias + ReLU

    # AvgPool1d(7) evaluated only at the last complete window, then Linear.
    pooled = jnp.dot(act, pool_ref[...], preferred_element_type=f32)   # (c_last_p, B)
    lin = slab_ref[pl.ds(lin_off, n_out), :]                  # (n_out, kc_max+1)
    z = jnp.dot(lin[:, :act.shape[0]], pooled,
                preferred_element_type=f32) + lin[:, kc_max:kc_max + 1]
    o_ref[...] = z.astype(o_ref.dtype)


# ----------------------------------------------------------------------------
# Wrapper: one pallas_call for the whole network
# ----------------------------------------------------------------------------
def pure1d_forward(x_ncl, params, *, dilation=1, compute_dtype=jnp.bfloat16):
    """x_ncl: (B, C_in, L) like PyTorch.  Returns (B, n_outputs)."""
    B, c_in0, L = x_ncl.shape
    convs = params["convs"]
    lin_w, lin_b = params["linear"]
    n_out = lin_w.shape[0]
    K = convs[0][0].shape[2]
    layer_cfg = [("same", 1), ("same", 1), ("valid", 2)] * 3
    assert len(convs) == len(layer_cfg)

    # ---- static geometry in the "full grid" domain (host-side, once) -------
    # Activations always live on the original L-point grid; after a stride-s
    # layer only multiples of the cumulative stride S are live.  Tap shifts,
    # 'same' zero padding, 'valid' cropping and batch isolation all become
    # static lane shifts + 0/1 masks.
    metas = []            # per layer: (row_off, c_in_p, c_out_p, shifts)
    mask_rows = []        # per layer*tap: (B*L,) float32
    q = np.arange(L)
    S, l_sub, c_prev, row_off = 1, L, c_in0, 0
    for (w, _), (pad_mode, stride) in zip(convs, layer_cfg):
        c_out, c_in, k_sz = w.shape
        assert c_in == c_prev and k_sz == K
        if pad_mode == "same":                 # PyTorch 'same' (stride == 1)
            pad_left = (dilation * (K - 1)) // 2
            l_out, s_out = l_sub, S
        else:                                  # 'valid'
            pad_left = 0
            l_out = (l_sub - dilation * (K - 1) - 1) // stride + 1
            s_out = S * stride
        c_in_p, c_out_p = _round_up(c_in, 8), _round_up(c_out, 8)
        shifts = tuple(S * (k * dilation - pad_left) for k in range(K))
        hi = S * (l_sub - 1)                   # last live input grid position
        for g in shifts:
            valid = ((q + g >= 0) & (q + g <= hi)).astype(np.float32)
            mask_rows.append(np.tile(valid, B))
        metas.append((row_off, c_in_p, c_out_p, shifts))
        row_off += c_out_p
        c_prev, S, l_sub = c_out, s_out, l_out

    # AvgPool1d(7): only the last complete window (== out[:, :, -1]).
    P_WIN = 7
    assert l_sub >= P_WIN, "AvgPool1d(7) needs at least 7 frames at the last stage"
    n_win = l_sub // P_WIN
    pool_np = np.zeros((B * L, B), np.float32)
    for b in range(B):
        for i in range((n_win - 1) * P_WIN, n_win * P_WIN):
            pool_np[b * L + S * i, b] = 1.0 / P_WIN

    # ---- pack ALL parameters into one zero-padded slab (single DMA) --------
    kc_max = K * max(m[1] for m in metas)
    lin_off = row_off
    n_rows = lin_off + _round_up(n_out, 8)
    slab = jnp.zeros((n_rows, kc_max + 1), jnp.float32)
    for (w, b), (off, c_in_p, c_out_p, _) in zip(convs, metas):
        c_out, c_in, _ = w.shape
        wt = jnp.transpose(w, (0, 2, 1))                       # (c_out, K, c_in)
        wt = jnp.pad(wt, ((0, c_out_p - c_out), (0, 0), (0, c_in_p - c_in)))
        slab = slab.at[off:off + c_out_p, :K * c_in_p].set(
            wt.reshape(c_out_p, K * c_in_p))
        slab = slab.at[off:off + c_out, kc_max].set(b)
    c_last_p = metas[-1][2]
    lw_pad = jnp.pad(lin_w.astype(jnp.float32),
                     ((0, 0), (0, c_last_p - lin_w.shape[1])))
    slab = slab.at[lin_off:lin_off + n_out, :c_last_p].set(lw_pad)
    slab = slab.at[lin_off:lin_off + n_out, kc_max].set(lin_b)

    masks = jnp.asarray(np.stack(mask_rows, axis=0))           # (9*K, B*L) f32
    pool_m = jnp.asarray(pool_np)                              # (B*L, B)   f32
    x_p = jnp.pad(x_ncl.astype(jnp.float32),
                  ((0, 0), (0, metas[0][1] - c_in0), (0, 0)))  # (B, C_in_p, L)

    kern = functools.partial(
        _fused_pure1d_kernel, metas=tuple(metas), K=K, kc_max=kc_max,
        lin_off=lin_off, n_out=n_out, compute_dtype=compute_dtype)

    def full_spec(a):
        return pl.BlockSpec(a.shape, lambda i, _nd=a.ndim: (0,) * _nd)

    inputs = [x_p, slab, masks, pool_m]
    out_t = pl.pallas_call(
        kern,
        out_shape=jax.ShapeDtypeStruct((n_out, B), x_ncl.dtype),
        grid=(1,),
        in_specs=[full_spec(a) for a in inputs],
        out_specs=pl.BlockSpec((n_out, B), lambda i: (0, 0)),
        compiler_params=pltpu.CompilerParams(dimension_semantics=("arbitrary",)),
    )(*inputs)

    # 40-byte transpose, fused by XLA; kept out of the kernel on purpose.
    return out_t.T


# ----------------------------------------------------------------------------
# Deterministic parameter construction (weight_norm reparametrization)
# ----------------------------------------------------------------------------
def make_wn_conv(key, c_in, c_out, k):
    kv, kg, kb = jax.random.split(key, 3)
    v = 0.05 * jax.random.normal(kv, (c_out, c_in, k), jnp.float32)
    g = 1.0 + 0.1 * jax.random.normal(kg, (c_out,), jnp.float32)
    b = 0.05 * jax.random.normal(kb, (c_out,), jnp.float32)
    norm = jnp.sqrt(jnp.sum(v * v, axis=(1, 2), keepdims=True))
    w = g[:, None, None] * v / norm              # weight_norm effective weight
    return w, b


def make_params(key, n_inputs, n_outputs, kernel_size):
    layer_io = [
        (n_inputs, n_inputs),          # conv1_1
        (n_inputs, n_inputs * 2),      # conv1_2
        (n_inputs * 2, n_inputs * 2),  # conv1_3 (stride 2, valid)
        (n_inputs * 2, n_inputs * 2),  # conv2_1
        (n_inputs * 2, n_inputs * 2),  # conv2_2
        (n_inputs * 2, n_inputs * 2),  # conv2_3 (stride 2, valid)
        (n_inputs * 2, n_inputs * 4),  # conv3_1
        (n_inputs * 4, n_inputs * 4),  # conv3_2
        (n_inputs * 4, n_inputs),      # conv3_3 (stride 2, valid)
    ]
    keys = jax.random.split(key, len(layer_io) + 1)
    convs = [make_wn_conv(keys[i], ci, co, kernel_size)
             for i, (ci, co) in enumerate(layer_io)]
    klw, klb = jax.random.split(keys[-1])
    lin_w = 0.1 * jax.random.normal(klw, (n_outputs, n_inputs), jnp.float32)
    lin_b = 0.1 * jax.random.normal(klb, (n_outputs,), jnp.float32)
    return {"convs": convs, "linear": (lin_w, lin_b)}


# ----------------------------------------------------------------------------
# Pure-JAX reference (independent implementation) for a numerical self-check
# ----------------------------------------------------------------------------
def _reference_forward(x_ncl, params, *, dilation=1):
    x = x_ncl
    layer_cfg = [("same", 1), ("same", 1), ("valid", 2)] * 3
    for (w, b), (pad, stride) in zip(params["convs"], layer_cfg):
        K = w.shape[2]
        if pad == "same":
            total = dilation * (K - 1)
            padcfg = [(total // 2, total - total // 2)]
        else:
            padcfg = [(0, 0)]
        y = jax.lax.conv_general_dilated(
            x, w, window_strides=(stride,), padding=padcfg,
            rhs_dilation=(dilation,), dimension_numbers=("NCH", "OIH", "NCH"),
            precision=jax.lax.Precision.HIGHEST)
        x = jax.nn.relu(y + b[None, :, None])
    L3 = x.shape[2]
    n_win = L3 // 7
    window = x[:, :, (n_win - 1) * 7: n_win * 7]
    m = jnp.mean(window, axis=2)
    lin_w, lin_b = params["linear"]
    return m @ lin_w.T + lin_b


if __name__ == "__main__":
    B, n_inputs, n_outputs, kernel_size, L = 2, 4, 5, 3, 128

    key = jax.random.PRNGKey(0)
    kx, kp = jax.random.split(key)
    x = jax.random.normal(kx, (B, n_inputs, L), jnp.float32)   # NCL, like PyTorch
    params = make_params(kp, n_inputs, n_outputs, kernel_size)

    ref = jax.block_until_ready(_reference_forward(x, params))

    # Strict check on the f32-operand path (exact math of the module).
    fwd_f32 = jax.jit(functools.partial(pure1d_forward, compute_dtype=jnp.float32))
    out_f32 = jax.block_until_ready(fwd_f32(x, params))
    assert out_f32.shape == (B, n_outputs), out_f32.shape
    assert jnp.allclose(out_f32, ref, atol=5e-3, rtol=5e-3), (out_f32, ref)

    # Default fast path: bf16 MXU operands, f32 accumulation (v6e/v7x native).
    fwd = jax.jit(pure1d_forward)
    out = jax.block_until_ready(fwd(x, params))
    assert out.shape == (B, n_outputs), out.shape
    assert jnp.allclose(out, ref, atol=5e-2, rtol=5e-2), (out, ref)

    print("KERNEL_OK")
</pallas_src>

<mosaic_0001>
module attributes {stable_mosaic.version = 11 : i64} {
  func.func @_fused_pure1d_kernel(%arg0: i32, %arg1: memref<2x8x128xf32, #tpu.memory_space<vmem>>, %arg2: memref<96x49xf32, #tpu.memory_space<vmem>>, %arg3: memref<27x256xf32, #tpu.memory_space<vmem>>, %arg4: memref<256x2xf32, #tpu.memory_space<vmem>>, %arg5: memref<5x2xf32, #tpu.memory_space<vmem>>) attributes {dimension_semantics = [#tpu.dimension_semantics<arbitrary>], iteration_bounds = array<i64: 1>, scalar_prefetch = 0 : i64, scratch_operands = 0 : i64, tpu.core_type = #tpu.core_type<tc>, window_params = [{pipeline_mode = #tpu.pipeline_mode<synchronous>, transform_indices = @transform_0, window_bounds = array<i64: 2, 8, 128>}, {pipeline_mode = #tpu.pipeline_mode<synchronous>, transform_indices = @transform_1, window_bounds = array<i64: 96, 49>}, {pipeline_mode = #tpu.pipeline_mode<synchronous>, transform_indices = @transform_2, window_bounds = array<i64: 27, 256>}, {pipeline_mode = #tpu.pipeline_mode<synchronous>, transform_indices = @transform_3, window_bounds = array<i64: 256, 2>}, {pipeline_mode = #tpu.pipeline_mode<synchronous>, transform_indices = @transform_4, window_bounds = array<i64: 5, 2>}]} {
    %c0 = arith.constant 0 : index
    %c0_0 = arith.constant 0 : index
    %c0_1 = arith.constant 0 : index
    %0 = vector.load %arg1[%c0, %c0_0, %c0_1] : memref<2x8x128xf32, #tpu.memory_space<vmem>>, vector<1x8x128xf32>
    %1 = vector.shape_cast %0 : vector<1x8x128xf32> to vector<8x128xf32>
    %c1 = arith.constant 1 : index
    %c0_2 = arith.constant 0 : index
    %c0_3 = arith.constant 0 : index
    %2 = vector.load %arg1[%c1, %c0_2, %c0_3] : memref<2x8x128xf32, #tpu.memory_space<vmem>>, vector<1x8x128xf32>
    %3 = vector.shape_cast %2 : vector<1x8x128xf32> to vector<8x128xf32>
    %4 = tpu.concatenate %1, %3 in 1 : vector<8x128xf32>, vector<8x128xf32> -> vector<8x256xf32>
    %c0_4 = arith.constant 0 : index
    %c0_5 = arith.constant 0 : index
    %5 = vector.load %arg2[%c0_4, %c0_5] : memref<96x49xf32, #tpu.memory_space<vmem>>, vector<8x49xf32>
    %6 = vector.extract_strided_slice %5 {offsets = [0, 0], sizes = [8, 24], strides = [1, 1]} : vector<8x49xf32> to vector<8x24xf32>
    %7 = vector.extract_strided_slice %5 {offsets = [0, 48], sizes = [8, 1], strides = [1, 1]} : vector<8x49xf32> to vector<8x1xf32>
    %c0_6 = arith.constant 0 : index
    %c0_7 = arith.constant 0 : index
    %8 = vector.load %arg3[%c0_6, %c0_7] : memref<27x256xf32, #tpu.memory_space<vmem>>, vector<1x256xf32>
    %cst = arith.constant 0.000000e+00 : f32
    %9 = vector.broadcast %cst : f32 to vector<8x1xf32>
    %10 = vector.extract_strided_slice %4 {offsets = [0, 0], sizes = [8, 255], strides = [1, 1]} : vector<8x256xf32> to vector<8x255xf32>
    %11 = tpu.concatenate %9, %10 in 1 : vector<8x1xf32>, vector<8x255xf32> -> vector<8x256xf32>
    %12 = vector.broadcast %8 : vector<1x256xf32> to vector<8x256xf32>
    %13 = arith.mulf %11, %12 : vector<8x256xf32>
    %c1_8 = arith.constant 1 : index
    %c0_9 = arith.constant 0 : index
    %14 = vector.load %arg3[%c1_8, %c0_9] : memref<27x256xf32, #tpu.memory_space<vmem>>, vector<1x256xf32>
    %15 = vector.broadcast %14 : vector<1x256xf32> to vector<8x256xf32>
    %16 = arith.mulf %4, %15 : vector<8x256xf32>
    %c2 = arith.constant 2 : index
    %c0_10 = arith.constant 0 : index
    %17 = vector.load %arg3[%c2, %c0_10] : memref<27x256xf32, #tpu.memory_space<vmem>>, vector<1x256xf32>
    %cst_11 = arith.constant 0.000000e+00 : f32
    %18 = vector.broadcast %cst_11 : f32 to vector<8x1xf32>
    %19 = vector.extract_strided_slice %4 {offsets = [0, 1], sizes = [8, 255], strides = [1, 1]} : vector<8x256xf32> to vector<8x255xf32>
    %20 = tpu.concatenate %19, %18 in 1 : vector<8x255xf32>, vector<8x1xf32> -> vector<8x256xf32>
    %21 = vector.broadcast %17 : vector<1x256xf32> to vector<8x256xf32>
    %22 = arith.mulf %20, %21 : vector<8x256xf32>
    %23 = tpu.concatenate %13, %16, %22 in 0 : vector<8x256xf32>, vector<8x256xf32>, vector<8x256xf32> -> vector<24x256xf32>
    %cst_12 = arith.constant dense<0.000000e+00> : vector<8x256xf32>
    %24 = tpu.matmul %6, %23, %cst_12 {dimension_numbers = #tpu.dot_dimension_numbers<[1], [0], [0], [1], [0, 0, 1, 1], [], []>} : vector<8x24xf32>, vector<24x256xf32>, vector<8x256xf32> -> vector<8x256xf32>
    %25 = vector.broadcast %7 : vector<8x1xf32> to vector<8x256xf32>
    %26 = arith.addf %24, %25 : vector<8x256xf32>
    %cst_13 = arith.constant 0.000000e+00 : f32
    %27 = vector.broadcast %cst_13 : f32 to vector<8x256xf32>
    %28 = arith.maximumf %26, %27 : vector<8x256xf32>
    %c8 = arith.constant 8 : index
    %c0_14 = arith.constant 0 : index
    %29 = vector.load %arg2[%c8, %c0_14] : memref<96x49xf32, #tpu.memory_space<vmem>>, vector<8x49xf32>
    %30 = vector.extract_strided_slice %29 {offsets = [0, 0], sizes = [8, 24], strides = [1, 1]} : vector<8x49xf32> to vector<8x24xf32>
    %31 = vector.extract_strided_slice %29 {offsets = [0, 48], sizes = [8, 1], strides = [1, 1]} : vector<8x49xf32> to vector<8x1xf32>
    %c3 = arith.constant 3 : index
    %c0_15 = arith.constant 0 : index
    %32 = vector.load %arg3[%c3, %c0_15] : memref<27x256xf32, #tpu.memory_space<vmem>>, vector<1x256xf32>
    %cst_16 = arith.constant 0.000000e+00 : f32
    %33 = vector.broadcast %cst_16 : f32 to vector<8x1xf32>
    %34 = vector.extract_strided_slice %28 {offsets = [0, 0], sizes = [8, 255], strides = [1, 1]} : vector<8x256xf32> to vector<8x255xf32>
    %35 = tpu.concatenate %33, %34 in 1 : vector<8x1xf32>, vector<8x255xf32> -> vector<8x256xf32>
    %36 = vector.broadcast %32 : vector<1x256xf32> to vector<8x256xf32>
    %37 = arith.mulf %35, %36 : vector<8x256xf32>
    %c4 = arith.constant 4 : index
    %c0_17 = arith.constant 0 : index
    %38 = vector.load %arg3[%c4, %c0_17] : memref<27x256xf32, #tpu.memory_space<vmem>>, vector<1x256xf32>
    %39 = vector.broadcast %38 : vector<1x256xf32> to vector<8x256xf32>
    %40 = arith.mulf %28, %39 : vector<8x256xf32>
    %c5 = arith.constant 5 : index
    %c0_18 = arith.constant 0 : index
    %41 = vector.load %arg3[%c5, %c0_18] : memref<27x256xf32, #tpu.memory_space<vmem>>, vector<1x256xf32>
    %cst_19 = arith.constant 0.000000e+00 : f32
    %42 = vector.broadcast %cst_19 : f32 to vector<8x1xf32>
    %43 = vector.extract_strided_slice %28 {offsets = [0, 1], sizes = [8, 255], strides = [1, 1]} : vector<8x256xf32> to vector<8x255xf32>
    %44 = tpu.concatenate %43, %42 in 1 : vector<8x255xf32>, vector<8x1xf32> -> vector<8x256xf32>
    %45 = vector.broadcast %41 : vector<1x256xf32> to vector<8x256xf32>
    %46 = arith.mulf %44, %45 : vector<8x256xf32>
    %47 = tpu.concatenate %37, %40, %46 in 0 : vector<8x256xf32>, vector<8x256xf32>, vector<8x256xf32> -> vector<24x256xf32>
    %cst_20 = arith.constant dense<0.000000e+00> : vector<8x256xf32>
    %48 = tpu.matmul %30, %47, %cst_20 {dimension_numbers = #tpu.dot_dimension_numbers<[1], [0], [0], [1], [0, 0, 1, 1], [], []>} : vector<8x24xf32>, vector<24x256xf32>, vector<8x256xf32> -> vector<8x256xf32>
    %49 = vector.broadcast %31 : vector<8x1xf32> to vector<8x256xf32>
    %50 = arith.addf %48, %49 : vector<8x256xf32>
    %cst_21 = arith.constant 0.000000e+00 : f32
    %51 = vector.broadcast %cst_21 : f32 to vector<8x256xf32>
    %52 = arith.maximumf %50, %51 : vector<8x256xf32>
    %c16 = arith.constant 16 : index
    %c0_22 = arith.constant 0 : index
    %53 = vector.load %arg2[%c16, %c0_22] : memref<96x49xf32, #tpu.memory_space<vmem>>, vector<8x49xf32>
    %54 = vector.extract_strided_slice %53 {offsets = [0, 0], sizes = [8, 24], strides = [1, 1]} : vector<8x49xf32> to vector<8x24xf32>
    %55 = vector.extract_strided_slice %53 {offsets = [0, 48], sizes = [8, 1], strides = [1, 1]} : vector<8x49xf32> to vector<8x1xf32>
    %c6 = arith.constant 6 : index
    %c0_23 = arith.constant 0 : index
    %56 = vector.load %arg3[%c6, %c0_23] : memref<27x256xf32, #tpu.memory_space<vmem>>, vector<1x256xf32>
    %57 = vector.broadcast %56 : vector<1x256xf32> to vector<8x256xf32>
    %58 = arith.mulf %52, %57 : vector<8x256xf32>
    %c7 = arith.constant 7 : index
    %c0_24 = arith.constant 0 : index
    %59 = vector.load %arg3[%c7, %c0_24] : memref<27x256xf32, #tpu.memory_space<vmem>>, vector<1x256xf32>
    %cst_25 = arith.constant 0.000000e+00 : f32
    %60 = vector.broadcast %cst_25 : f32 to vector<8x1xf32>
    %61 = vector.extract_strided_slice %52 {offsets = [0, 1], sizes = [8, 255], strides = [1, 1]} : vector<8x256xf32> to vector<8x255xf32>
    %62 = tpu.concatenate %61, %60 in 1 : vector<8x255xf32>, vector<8x1xf32> -> vector<8x256xf32>
    %63 = vector.broadcast %59 : vector<1x256xf32> to vector<8x256xf32>
    %64 = arith.mulf %62, %63 : vector<8x256xf32>
    %c8_26 = arith.constant 8 : index
    %c0_27 = arith.constant 0 : index
    %65 = vector.load %arg3[%c8_26, %c0_27] : memref<27x256xf32, #tpu.memory_space<vmem>>, vector<1x256xf32>
    %cst_28 = arith.constant 0.000000e+00 : f32
    %66 = vector.broadcast %cst_28 : f32 to vector<8x2xf32>
    %67 = vector.extract_strided_slice %52 {offsets = [0, 2], sizes = [8, 254], strides = [1, 1]} : vector<8x256xf32> to vector<8x254xf32>
    %68 = tpu.concatenate %67, %66 in 1 : vector<8x254xf32>, vector<8x2xf32> -> vector<8x256xf32>
    %69 = vector.broadcast %65 : vector<1x256xf32> to vector<8x256xf32>
    %70 = arith.mulf %68, %69 : vector<8x256xf32>
    %71 = tpu.concatenate %58, %64, %70 in 0 : vector<8x256xf32>, vector<8x256xf32>, vector<8x256xf32> -> vector<24x256xf32>
    %cst_29 = arith.constant dense<0.000000e+00> : vector<8x256xf32>
    %72 = tpu.matmul %54, %71, %cst_29 {dimension_numbers = #tpu.dot_dimension_numbers<[1], [0], [0], [1], [0, 0, 1, 1], [], []>} : vector<8x24xf32>, vector<24x256xf32>, vector<8x256xf32> -> vector<8x256xf32>
    %73 = vector.broadcast %55 : vector<8x1xf32> to vector<8x256xf32>
    %74 = arith.addf %72, %73 : vector<8x256xf32>
    %cst_30 = arith.constant 0.000000e+00 : f32
    %75 = vector.broadcast %cst_30 : f32 to vector<8x256xf32>
    %76 = arith.maximumf %74, %75 : vector<8x256xf32>
    %c24 = arith.constant 24 : index
    %c0_31 = arith.constant 0 : index
    %77 = vector.load %arg2[%c24, %c0_31] : memref<96x49xf32, #tpu.memory_space<vmem>>, vector<8x49xf32>
    %78 = vector.extract_strided_slice %77 {offsets = [0, 0], sizes = [8, 24], strides = [1, 1]} : vector<8x49xf32> to vector<8x24xf32>
    %79 = vector.extract_strided_slice %77 {offsets = [0, 48], sizes = [8, 1], strides = [1, 1]} : vector<8x49xf32> to vector<8x1xf32>
    %c9 = arith.constant 9 : index
    %c0_32 = arith.constant 0 : index
    %80 = vector.load %arg3[%c9, %c0_32] : memref<27x256xf32, #tpu.memory_space<vmem>>, vector<1x256xf32>
    %cst_33 = arith.constant 0.000000e+00 : f32
    %81 = vector.broadcast %cst_33 : f32 to vector<8x2xf32>
    %82 = vector.extract_strided_slice %76 {offsets = [0, 0], sizes = [8, 254], strides = [1, 1]} : vector<8x256xf32> to vector<8x254xf32>
    %83 = tpu.concatenate %81, %82 in 1 : vector<8x2xf32>, vector<8x254xf32> -> vector<8x256xf32>
    %84 = vector.broadcast %80 : vector<1x256xf32> to vector<8x256xf32>
    %85 = arith.mulf %83, %84 : vector<8x256xf32>
    %c10 = arith.constant 10 : index
    %c0_34 = arith.constant 0 : index
    %86 = vector.load %arg3[%c10, %c0_34] : memref<27x256xf32, #tpu.memory_space<vmem>>, vector<1x256xf32>
    %87 = vector.broadcast %86 : vector<1x256xf32> to vector<8x256xf32>
    %88 = arith.mulf %76, %87 : vector<8x256xf32>
    %c11 = arith.constant 11 : index
    %c0_35 = arith.constant 0 : index
    %89 = vector.load %arg3[%c11, %c0_35] : memref<27x256xf32, #tpu.memory_space<vmem>>, vector<1x256xf32>
    %cst_36 = arith.constant 0.000000e+00 : f32
    %90 = vector.broadcast %cst_36 : f32 to vector<8x2xf32>
    %91 = vector.extract_strided_slice %76 {offsets = [0, 2], sizes = [8, 254], strides = [1, 1]} : vector<8x256xf32> to vector<8x254xf32>
    %92 = tpu.concatenate %91, %90 in 1 : vector<8x254xf32>, vector<8x2xf32> -> vector<8x256xf32>
    %93 = vector.broadcast %89 : vector<1x256xf32> to vector<8x256xf32>
    %94 = arith.mulf %92, %93 : vector<8x256xf32>
    %95 = tpu.concatenate %85, %88, %94 in 0 : vector<8x256xf32>, vector<8x256xf32>, vector<8x256xf32> -> vector<24x256xf32>
    %cst_37 = arith.constant dense<0.000000e+00> : vector<8x256xf32>
    %96 = tpu.matmul %78, %95, %cst_37 {dimension_numbers = #tpu.dot_dimension_numbers<[1], [0], [0], [1], [0, 0, 1, 1], [], []>} : vector<8x24xf32>, vector<24x256xf32>, vector<8x256xf32> -> vector<8x256xf32>
    %97 = vector.broadcast %79 : vector<8x1xf32> to vector<8x256xf32>
    %98 = arith.addf %96, %97 : vector<8x256xf32>
    %cst_38 = arith.constant 0.000000e+00 : f32
    %99 = vector.broadcast %cst_38 : f32 to vector<8x256xf32>
    %100 = arith.maximumf %98, %99 : vector<8x256xf32>
    %c32 = arith.constant 32 : index
    %c0_39 = arith.constant 0 : index
    %101 = vector.load %arg2[%c32, %c0_39] : memref<96x49xf32, #tpu.memory_space<vmem>>, vector<8x49xf32>
    %102 = vector.extract_strided_slice %101 {offsets = [0, 0], sizes = [8, 24], strides = [1, 1]} : vector<8x49xf32> to vector<8x24xf32>
    %103 = vector.extract_strided_slice %101 {offsets = [0, 48], sizes = [8, 1], strides = [1, 1]} : vector<8x49xf32> to vector<8x1xf32>
    %c12 = arith.constant 12 : index
    %c0_40 = arith.constant 0 : index
    %104 = vector.load %arg3[%c12, %c0_40] : memref<27x256xf32, #tpu.memory_space<vmem>>, vector<1x256xf32>
    %cst_41 = arith.constant 0.000000e+00 : f32
    %105 = vector.broadcast %cst_41 : f32 to vector<8x2xf32>
    %106 = vector.extract_strided_slice %100 {offsets = [0, 0], sizes = [8, 254], strides = [1, 1]} : vector<8x256xf32> to vector<8x254xf32>
    %107 = tpu.concatenate %105, %106 in 1 : vector<8x2xf32>, vector<8x254xf32> -> vector<8x256xf32>
    %108 = vector.broadcast %104 : vector<1x256xf32> to vector<8x256xf32>
    %109 = arith.mulf %107, %108 : vector<8x256xf32>
    %c13 = arith.constant 13 : index
    %c0_42 = arith.constant 0 : index
    %110 = vector.load %arg3[%c13, %c0_42] : memref<27x256xf32, #tpu.memory_space<vmem>>, vector<1x256xf32>
    %111 = vector.broadcast %110 : vector<1x256xf32> to vector<8x256xf32>
    %112 = arith.mulf %100, %111 : vector<8x256xf32>
    %c14 = arith.constant 14 : index
    %c0_43 = arith.constant 0 : index
    %113 = vector.load %arg3[%c14, %c0_43] : memref<27x256xf32, #tpu.memory_space<vmem>>, vector<1x256xf32>
    %cst_44 = arith.constant 0.000000e+00 : f32
    %114 = vector.broadcast %cst_44 : f32 to vector<8x2xf32>
    %115 = vector.extract_strided_slice %100 {offsets = [0, 2], sizes = [8, 254], strides = [1, 1]} : vector<8x256xf32> to vector<8x254xf32>
    %116 = tpu.concatenate %115, %114 in 1 : vector<8x254xf32>, vector<8x2xf32> -> vector<8x256xf32>
    %117 = vector.broadcast %113 : vector<1x256xf32> to vector<8x256xf32>
    %118 = arith.mulf %116, %117 : vector<8x256xf32>
    %119 = tpu.concatenate %109, %112, %118 in 0 : vector<8x256xf32>, vector<8x256xf32>, vector<8x256xf32> -> vector<24x256xf32>
    %cst_45 = arith.constant dense<0.000000e+00> : vector<8x256xf32>
    %120 = tpu.matmul %102, %119, %cst_45 {dimension_numbers = #tpu.dot_dimension_numbers<[1], [0], [0], [1], [0, 0, 1, 1], [], []>} : vector<8x24xf32>, vector<24x256xf32>, vector<8x256xf32> -> vector<8x256xf32>
    %121 = vector.broadcast %103 : vector<8x1xf32> to vector<8x256xf32>
    %122 = arith.addf %120, %121 : vector<8x256xf32>
    %cst_46 = arith.constant 0.000000e+00 : f32
    %123 = vector.broadcast %cst_46 : f32 to vector<8x256xf32>
    %124 = arith.maximumf %122, %123 : vector<8x256xf32>
    %c40 = arith.constant 40 : index
    %c0_47 = arith.constant 0 : index
    %125 = vector.load %arg2[%c40, %c0_47] : memref<96x49xf32, #tpu.memory_space<vmem>>, vector<8x49xf32>
    %126 = vector.extract_strided_slice %125 {offsets = [0, 0], sizes = [8, 24], strides = [1, 1]} : vector<8x49xf32> to vector<8x24xf32>
    %127 = vector.extract_strided_slice %125 {offsets = [0, 48], sizes = [8, 1], strides = [1, 1]} : vector<8x49xf32> to vector<8x1xf32>
    %c15 = arith.constant 15 : index
    %c0_48 = arith.constant 0 : index
    %128 = vector.load %arg3[%c15, %c0_48] : memref<27x256xf32, #tpu.memory_space<vmem>>, vector<1x256xf32>
    %129 = vector.broadcast %128 : vector<1x256xf32> to vector<8x256xf32>
    %130 = arith.mulf %124, %129 : vector<8x256xf32>
    %c16_49 = arith.constant 16 : index
    %c0_50 = arith.constant 0 : index
    %131 = vector.load %arg3[%c16_49, %c0_50] : memref<27x256xf32, #tpu.memory_space<vmem>>, vector<1x256xf32>
    %cst_51 = arith.constant 0.000000e+00 : f32
    %132 = vector.broadcast %cst_51 : f32 to vector<8x2xf32>
    %133 = vector.extract_strided_slice %124 {offsets = [0, 2], sizes = [8, 254], strides = [1, 1]} : vector<8x256xf32> to vector<8x254xf32>
    %134 = tpu.concatenate %133, %132 in 1 : vector<8x254xf32>, vector<8x2xf32> -> vector<8x256xf32>
    %135 = vector.broadcast %131 : vector<1x256xf32> to vector<8x256xf32>
    %136 = arith.mulf %134, %135 : vector<8x256xf32>
    %c17 = arith.constant 17 : index
    %c0_52 = arith.constant 0 : index
    %137 = vector.load %arg3[%c17, %c0_52] : memref<27x256xf32, #tpu.memory_space<vmem>>, vector<1x256xf32>
    %cst_53 = arith.constant 0.000000e+00 : f32
    %138 = vector.broadcast %cst_53 : f32 to vector<8x4xf32>
    %139 = vector.extract_strided_slice %124 {offsets = [0, 4], sizes = [8, 252], strides = [1, 1]} : vector<8x256xf32> to vector<8x252xf32>
    %140 = tpu.concatenate %139, %138 in 1 : vector<8x252xf32>, vector<8x4xf32> -> vector<8x256xf32>
    %141 = vector.broadcast %137 : vector<1x256xf32> to vector<8x256xf32>
    %142 = arith.mulf %140, %141 : vector<8x256xf32>
    %143 = tpu.concatenate %130, %136, %142 in 0 : vector<8x256xf32>, vector<8x256xf32>, vector<8x256xf32> -> vector<24x256xf32>
    %cst_54 = arith.constant dense<0.000000e+00> : vector<8x256xf32>
    %144 = tpu.matmul %126, %143, %cst_54 {dimension_numbers = #tpu.dot_dimension_numbers<[1], [0], [0], [1], [0, 0, 1, 1], [], []>} : vector<8x24xf32>, vector<24x256xf32>, vector<8x256xf32> -> vector<8x256xf32>
    %145 = vector.broadcast %127 : vector<8x1xf32> to vector<8x256xf32>
    %146 = arith.addf %144, %145 : vector<8x256xf32>
    %cst_55 = arith.constant 0.000000e+00 : f32
    %147 = vector.broadcast %cst_55 : f32 to vector<8x256xf32>
    %148 = arith.maximumf %146, %147 : vector<8x256xf32>
    %c48 = arith.constant 48 : index
    %c0_56 = arith.constant 0 : index
    %149 = vector.load %arg2[%c48, %c0_56] : memref<96x49xf32, #tpu.memory_space<vmem>>, vector<16x49xf32>
    %150 = vector.extract_strided_slice %149 {offsets = [0, 0], sizes = [16, 24], strides = [1, 1]} : vector<16x49xf32> to vector<16x24xf32>
    %151 = vector.extract_strided_slice %149 {offsets = [0, 48], sizes = [16, 1], strides = [1, 1]} : vector<16x49xf32> to vector<16x1xf32>
    %c18 = arith.constant 18 : index
    %c0_57 = arith.constant 0 : index
    %152 = vector.load %arg3[%c18, %c0_57] : memref<27x256xf32, #tpu.memory_space<vmem>>, vector<1x256xf32>
    %cst_58 = arith.constant 0.000000e+00 : f32
    %153 = vector.broadcast %cst_58 : f32 to vector<8x4xf32>
    %154 = vector.extract_strided_slice %148 {offsets = [0, 0], sizes = [8, 252], strides = [1, 1]} : vector<8x256xf32> to vector<8x252xf32>
    %155 = tpu.concatenate %153, %154 in 1 : vector<8x4xf32>, vector<8x252xf32> -> vector<8x256xf32>
    %156 = vector.broadcast %152 : vector<1x256xf32> to vector<8x256xf32>
    %157 = arith.mulf %155, %156 : vector<8x256xf32>
    %c19 = arith.constant 19 : index
    %c0_59 = arith.constant 0 : index
    %158 = vector.load %arg3[%c19, %c0_59] : memref<27x256xf32, #tpu.memory_space<vmem>>, vector<1x256xf32>
    %159 = vector.broadcast %158 : vector<1x256xf32> to vector<8x256xf32>
    %160 = arith.mulf %148, %159 : vector<8x256xf32>
    %c20 = arith.constant 20 : index
    %c0_60 = arith.constant 0 : index
    %161 = vector.load %arg3[%c20, %c0_60] : memref<27x256xf32, #tpu.memory_space<vmem>>, vector<1x256xf32>
    %cst_61 = arith.constant 0.000000e+00 : f32
    %162 = vector.broadcast %cst_61 : f32 to vector<8x4xf32>
    %163 = vector.extract_strided_slice %148 {offsets = [0, 4], sizes = [8, 252], strides = [1, 1]} : vector<8x256xf32> to vector<8x252xf32>
    %164 = tpu.concatenate %163, %162 in 1 : vector<8x252xf32>, vector<8x4xf32> -> vector<8x256xf32>
    %165 = vector.broadcast %161 : vector<1x256xf32> to vector<8x256xf32>
    %166 = arith.mulf %164, %165 : vector<8x256xf32>
    %167 = tpu.concatenate %157, %160, %166 in 0 : vector<8x256xf32>, vector<8x256xf32>, vector<8x256xf32> -> vector<24x256xf32>
    %cst_62 = arith.constant dense<0.000000e+00> : vector<16x256xf32>
    %168 = tpu.matmul %150, %167, %cst_62 {dimension_numbers = #tpu.dot_dimension_numbers<[1], [0], [0], [1], [0, 0, 1, 1], [], []>} : vector<16x24xf32>, vector<24x256xf32>, vector<16x256xf32> -> vector<16x256xf32>
    %169 = vector.broadcast %151 : vector<16x1xf32> to vector<16x256xf32>
    %170 = arith.addf %168, %169 : vector<16x256xf32>
    %cst_63 = arith.constant 0.000000e+00 : f32
    %171 = vector.broadcast %cst_63 : f32 to vector<16x256xf32>
    %172 = arith.maximumf %170, %171 : vector<16x256xf32>
    %c64 = arith.constant 64 : index
    %c0_64 = arith.constant 0 : index
    %173 = vector.load %arg2[%c64, %c0_64] : memref<96x49xf32, #tpu.memory_space<vmem>>, vector<16x49xf32>
    %174 = vector.extract_strided_slice %173 {offsets = [0, 0], sizes = [16, 48], strides = [1, 1]} : vector<16x49xf32> to vector<16x48xf32>
    %175 = vector.extract_strided_slice %173 {offsets = [0, 48], sizes = [16, 1], strides = [1, 1]} : vector<16x49xf32> to vector<16x1xf32>
    %c21 = arith.constant 21 : index
    %c0_65 = arith.constant 0 : index
    %176 = vector.load %arg3[%c21, %c0_65] : memref<27x256xf32, #tpu.memory_space<vmem>>, vector<1x256xf32>
    %cst_66 = arith.constant 0.000000e+00 : f32
    %177 = vector.broadcast %cst_66 : f32 to vector<16x4xf32>
    %178 = vector.extract_strided_slice %172 {offsets = [0, 0], sizes = [16, 252], strides = [1, 1]} : vector<16x256xf32> to vector<16x252xf32>
    %179 = tpu.concatenate %177, %178 in 1 : vector<16x4xf32>, vector<16x252xf32> -> vector<16x256xf32>
    %180 = vector.broadcast %176 : vector<1x256xf32> to vector<16x256xf32>
    %181 = arith.mulf %179, %180 : vector<16x256xf32>
    %c22 = arith.constant 22 : index
    %c0_67 = arith.constant 0 : index
    %182 = vector.load %arg3[%c22, %c0_67] : memref<27x256xf32, #tpu.memory_space<vmem>>, vector<1x256xf32>
    %183 = vector.broadcast %182 : vector<1x256xf32> to vector<16x256xf32>
    %184 = arith.mulf %172, %183 : vector<16x256xf32>
    %c23 = arith.constant 23 : index
    %c0_68 = arith.constant 0 : index
    %185 = vector.load %arg3[%c23, %c0_68] : memref<27x256xf32, #tpu.memory_space<vmem>>, vector<1x256xf32>
    %cst_69 = arith.constant 0.000000e+00 : f32
    %186 = vector.broadcast %cst_69 : f32 to vector<16x4xf32>
    %187 = vector.extract_strided_slice %172 {offsets = [0, 4], sizes = [16, 252], strides = [1, 1]} : vector<16x256xf32> to vector<16x252xf32>
    %188 = tpu.concatenate %187, %186 in 1 : vector<16x252xf32>, vector<16x4xf32> -> vector<16x256xf32>
    %189 = vector.broadcast %185 : vector<1x256xf32> to vector<16x256xf32>
    %190 = arith.mulf %188, %189 : vector<16x256xf32>
    %191 = tpu.concatenate %181, %184, %190 in 0 : vector<16x256xf32>, vector<16x256xf32>, vector<16x256xf32> -> vector<48x256xf32>
    %cst_70 = arith.constant dense<0.000000e+00> : vector<16x256xf32>
    %192 = tpu.matmul %174, %191, %cst_70 {dimension_numbers = #tpu.dot_dimension_numbers<[1], [0], [0], [1], [0, 0, 1, 1], [], []>} : vector<16x48xf32>, vector<48x256xf32>, vector<16x256xf32> -> vector<16x256xf32>
    %193 = vector.broadcast %175 : vector<16x1xf32> to vector<16x256xf32>
    %194 = arith.addf %192, %193 : vector<16x256xf32>
    %cst_71 = arith.constant 0.000000e+00 : f32
    %195 = vector.broadcast %cst_71 : f32 to vector<16x256xf32>
    %196 = arith.maximumf %194, %195 : vector<16x256xf32>
    %c80 = arith.constant 80 : index
    %c0_72 = arith.constant 0 : index
    %197 = vector.load %arg2[%c80, %c0_72] : memref<96x49xf32, #tpu.memory_space<vmem>>, vector<8x49xf32>
    %198 = vector.extract_strided_slice %197 {offsets = [0, 0], sizes = [8, 48], strides = [1, 1]} : vector<8x49xf32> to vector<8x48xf32>
    %199 = vector.extract_strided_slice %197 {offsets = [0, 48], sizes = [8, 1], strides = [1, 1]} : vector<8x49xf32> to vector<8x1xf32>
    %c24_73 = arith.constant 24 : index
    %c0_74 = arith.constant 0 : index
    %200 = vector.load %arg3[%c24_73, %c0_74] : memref<27x256xf32, #tpu.memory_space<vmem>>, vector<1x256xf32>
    %201 = vector.broadcast %200 : vector<1x256xf32> to vector<16x256xf32>
    %202 = arith.mulf %196, %201 : vector<16x256xf32>
    %c25 = arith.constant 25 : index
    %c0_75 = arith.constant 0 : index
    %203 = vector.load %arg3[%c25, %c0_75] : memref<27x256xf32, #tpu.memory_space<vmem>>, vector<1x256xf32>
    %cst_76 = arith.constant 0.000000e+00 : f32
    %204 = vector.broadcast %cst_76 : f32 to vector<16x4xf32>
    %205 = vector.extract_strided_slice %196 {offsets = [0, 4], sizes = [16, 252], strides = [1, 1]} : vector<16x256xf32> to vector<16x252xf32>
    %206 = tpu.concatenate %205, %204 in 1 : vector<16x252xf32>, vector<16x4xf32> -> vector<16x256xf32>
    %207 = vector.broadcast %203 : vector<1x256xf32> to vector<16x256xf32>
    %208 = arith.mulf %206, %207 : vector<16x256xf32>
    %c26 = arith.constant 26 : index
    %c0_77 = arith.constant 0 : index
    %209 = vector.load %arg3[%c26, %c0_77] : memref<27x256xf32, #tpu.memory_space<vmem>>, vector<1x256xf32>
    %cst_78 = arith.constant 0.000000e+00 : f32
    %210 = vector.broadcast %cst_78 : f32 to vector<16x8xf32>
    %211 = vector.extract_strided_slice %196 {offsets = [0, 8], sizes = [16, 248], strides = [1, 1]} : vector<16x256xf32> to vector<16x248xf32>
    %212 = tpu.concatenate %211, %210 in 1 : vector<16x248xf32>, vector<16x8xf32> -> vector<16x256xf32>
    %213 = vector.broadcast %209 : vector<1x256xf32> to vector<16x256xf32>
    %214 = arith.mulf %212, %213 : vector<16x256xf32>
    %215 = tpu.concatenate %202, %208, %214 in 0 : vector<16x256xf32>, vector<16x256xf32>, vector<16x256xf32> -> vector<48x256xf32>
    %cst_79 = arith.constant dense<0.000000e+00> : vector<8x256xf32>
    %216 = tpu.matmul %198, %215, %cst_79 {dimension_numbers = #tpu.dot_dimension_numbers<[1], [0], [0], [1], [0, 0, 1, 1], [], []>} : vector<8x48xf32>, vector<48x256xf32>, vector<8x256xf32> -> vector<8x256xf32>
    %217 = vector.broadcast %199 : vector<8x1xf32> to vector<8x256xf32>
    %218 = arith.addf %216, %217 : vector<8x256xf32>
    %cst_80 = arith.constant 0.000000e+00 : f32
    %219 = vector.broadcast %cst_80 : f32 to vector<8x256xf32>
    %220 = arith.maximumf %218, %219 : vector<8x256xf32>
    %c0_81 = arith.constant 0 : index
    %c0_82 = arith.constant 0 : index
    %221 = vector.load %arg4[%c0_81, %c0_82] : memref<256x2xf32, #tpu.memory_space<vmem>>, vector<256x2xf32>
    %cst_83 = arith.constant dense<0.000000e+00> : vector<8x2xf32>
    %222 = tpu.matmul %220, %221, %cst_83 {dimension_numbers = #tpu.dot_dimension_numbers<[1], [0], [0], [1], [0, 0, 1, 1], [], []>} : vector<8x256xf32>, vector<256x2xf32>, vector<8x2xf32> -> vector<8x2xf32>
    %c88 = arith.constant 88 : index
    %c0_84 = arith.constant 0 : index
    %223 = vector.load %arg2[%c88, %c0_84] : memref<96x49xf32, #tpu.memory_space<vmem>>, vector<5x49xf32>
    %224 = vector.extract_strided_slice %223 {offsets = [0, 0], sizes = [5, 8], strides = [1, 1]} : vector<5x49xf32> to vector<5x8xf32>
    %cst_85 = arith.constant dense<0.000000e+00> : vector<5x2xf32>
    %225 = tpu.matmul %224, %222, %cst_85 {dimension_numbers = #tpu.dot_dimension_numbers<[1], [0], [0], [1], [0, 0, 1, 1], [], []>} : vector<5x8xf32>, vector<8x2xf32>, vector<5x2xf32> -> vector<5x2xf32>
    %226 = vector.extract_strided_slice %223 {offsets = [0, 48], sizes = [5, 1], strides = [1, 1]} : vector<5x49xf32> to vector<5x1xf32>
    %227 = vector.broadcast %226 : vector<5x1xf32> to vector<5x2xf32>
    %228 = arith.addf %225, %227 : vector<5x2xf32>
    %c0_86 = arith.constant 0 : index
    %c0_87 = arith.constant 0 : index
    %229 = vector.load %arg5[%c0_86, %c0_87] : memref<5x2xf32, #tpu.memory_space<vmem>>, vector<5x2xf32>
    tpu.vector_store %arg5[%c0_86, %c0_87], %228 {strides = array<i32>} : memref<5x2xf32, #tpu.memory_space<vmem>>, vector<5x2xf32>,
    return
  }
  func.func @transform_0(%arg0: i32) -> (i32, i32, i32) {
    %c0_i32 = arith.constant 0 : i32
    %c0_i32_0 = arith.constant 0 : i32
    %c0_i32_1 = arith.constant 0 : i32
    %c0_i32_2 = arith.constant 0 : i32
    return %c0_i32, %c0_i32_0, %c0_i32_1 : i32, i32, i32
  }
  func.func @transform_1(%arg0: i32) -> (i32, i32) {
    %c0_i32 = arith.constant 0 : i32
    %c0_i32_0 = arith.constant 0 : i32
    %c0_i32_1 = arith.constant 0 : i32
    return %c0_i32, %c0_i32_0 : i32, i32
  }
  func.func @transform_2(%arg0: i32) -> (i32, i32) {
    %c0_i32 = arith.constant 0 : i32
    %c0_i32_0 = arith.constant 0 : i32
    %c0_i32_1 = arith.constant 0 : i32
    return %c0_i32, %c0_i32_0 : i32, i32
  }
  func.func @transform_3(%arg0: i32) -> (i32, i32) {
    %c0_i32 = arith.constant 0 : i32
    %c0_i32_0 = arith.constant 0 : i32
    %c0_i32_1 = arith.constant 0 : i32
    return %c0_i32, %c0_i32_0 : i32, i32
  }
  func.func @transform_4(%arg0: i32) -> (i32, i32) {
    %c0_i32 = arith.constant 0 : i32
    %c0_i32_0 = arith.constant 0 : i32
    %c0_i32_1 = arith.constant 0 : i32
    return %c0_i32, %c0_i32_0 : i32, i32
  }
}

</mosaic_0001>

<bundles_post_ra>
// kernel: pure1d_forward.1
= control target key start
LH: loop header
LB: loop body
LE: loop exit
PB: predicated region body
PF: predicated region fallthrough
CT: control target
= control target key end

     0   :  { %s1131_s17 = smov 1   ;;  %s1132_s18 = smov 127   ;;  %v1133_v3 = vmov 48   ;;  %vm55_vm0 = vcmask 1039360   ;;  %vm28_vm1 = vcmask 7168   ;;  %vm72_vm2 = vcmask 195584   ;;  %s1526_s0 = inlined_call_operand.vmem [shape: f32[2,8,128], index: 0, kind: input, shape index: {}]   ;;  %s1527_s1 = inlined_call_operand.vmem [shape: f32[96,49], index: 1, kind: input, shape index: {}]   ;;  %s1528_s2 = inlined_call_operand.vmem [shape: f32[27,256], index: 2, kind: input, shape index: {}]   ;;  %s1529_s3 = inlined_call_operand.vmem [shape: f32[256,2], index: 3, kind: input, shape index: {}]   ;;  %s1530_s4 = inlined_call_operand.vmem [shape: f32[5,2], index: 4, kind: output, shape index: {}]  }
   0x1   :  { %v17_v0 = vld [vmem:[%s1526_s0] sm:$0xff]  ;;  %v1070_v1 = vld [vmem:[%s1526_s0 + $0x8] sm:$0xff]  ;;  %1128 = vset.pattern.permute.xlu2 %v1133_v3  ;;  %1129 = vset.pattern.permute.xlu0 %v1133_v3  ;;  %v1202_v35 = vld [vmem:[%s1527_s1 + $0x10] sm:$0xff]  ;;  %s1134_s12 = smov 126   ;;  %vm247_vm3 = vcmask 1031168   ;;  %s1135_s21 = smov 2  }
   0x2   :  { %24 = vrot.lane.b32.xlu1 %v17_v0, %s1131_s17  ;;  %51 = vrot.lane.b32.xlu0 %v17_v0, %s1132_s18  ;;  %v20_v2 = vld [vmem:[%s1527_s1] sm:$0xff]  ;;  %v117_v34 = vld [vmem:[%s1527_s1 + $0x8] sm:$0xff]  ;;  %vm317_vm4 = vcmask 15360   ;;  %s1136_s9 = smov 124   ;;  %vm534_vm5 = vcmask 1014784   ;;  %vm605_vm6 = vcmask 31744  }
   0x3   :  { %69 = vperm.xlu2 %1128, %v20_v2   ;;  %1130 = vset.pattern.permute.xlu1 %v1133_v3  ;;  %v1072_v6 = vld [vmem:[%s1528_s2 + $0x2] ss:$8 sm:$0x3]  ;;  %v1071_v7 = vld [vmem:[%s1528_s2 + $0x1] ss:$8 sm:$0x3] }
   0x4   :  { %v21_v8 = vld [vmem:[%s1528_s2] ss:$8 sm:$0x3]  ;;  %v61_v9 = vperm.slane %v1072_v6, 0  ;;  %v62_v10 = vperm.slane %v1072_v6, 1  ;;  %v43_v11 = vperm.slane %v1071_v7, 0 }
   0x5   :  { %v44_v12 = vperm.slane %v1071_v7, 1  ;;  %v34_v17 = vperm.slane %v21_v8, 0  ;;  %v35_v18 = vperm.slane %v21_v8, 1  ;;  %v1077_v37 = vld [vmem:[%s1528_s2 + $0x5] ss:$8 sm:$0x3] }
   0x6   :  { %v47_v21 = vmul.f32 %v43_v11, %v17_v0  ;;  %v1076_v38 = vld [vmem:[%s1528_s2 + $0x4] ss:$8 sm:$0x3]  ;;  %v157_v39 = vperm.slane %v1077_v37, 0  ;;  %v158_v40 = vperm.slane %v1077_v37, 1  ;;  %vm788_vm7 = vcmask 392192  }
   0x7   :  { %v48_v22 = vmul.f32 %v1070_v1, %v44_v12  ;;  %v1075_v41 = vld [vmem:[%s1528_s2 + $0x3] ss:$8 sm:$0x3]  ;;  %v140_v44 = vperm.slane %v1076_v38, 0  ;;  %v141_v45 = vperm.slane %v1076_v38, 1  ;;  %s1138_s14 = smov 120  }
   0x8   :  { %v131_v51 = vperm.slane %v1075_v41, 0  ;;  %v132_v52 = vperm.slane %v1075_v41, 1  ;;  %v1081_v7 = vld [vmem:[%s1528_s2 + $0x7] ss:$8 sm:$0x3]  ;;  %vm896_vm8 = vcmask 982016  }
   0x9   :  { %v1080_v8 = vld [vmem:[%s1528_s2 + $0x6] ss:$8 sm:$0x3]  ;;  %vm1041_vm9 = vcmask 64512   ;;  %vm1064_vm10 = vcmask 12288  }
   0xa   :  { %26 = vrot.lane.b32.xlu1 %v1070_v1, %s1131_s17  ;;  %53 = vrot.lane.b32.xlu0 %v1070_v1, %s1132_s18  ;;  %v217_v11 = vperm.slane %v1080_v8, 1 }
  0x5d   :  { %v70_v27 = vpop.permute.xlu2 %69 }
  0x74   :  { %v25_v4 = vpop.permute.xlu1 %24  ;;  %v52_v5 = vpop.permute.xlu0 %51 }
  0x75   :  { %v32_v23 = vsel %vm28_vm1, 0.0, %v25_v4 }
  0x76   :  { %v38_v25 = vmul.f32 %v34_v17, %v32_v23 }
  0x7c   :  { %v27_v13 = vpop.permute.xlu1 %26  ;;  %v54_v14 = vpop.permute.xlu0 %53 }
  0x7d   :  { %v56_v15 = vsel %vm55_vm0, %v52_v5, %v54_v14  ;;  %v59_v16 = vsel %vm55_vm0, %v54_v14, 0.0  ;;  %v29_v24 = vsel %vm28_vm1, %v25_v4, %v27_v13 }
  0x7e   :  { %v65_v19 = vmul.f32 %v61_v9, %v56_v15  ;;  %v66_v20 = vmul.f32 %v62_v10, %v59_v16  ;;  %v39_v26 = vmul.f32 %v35_v18, %v29_v24  ;;  %v236_v9 = vperm.slane %v1081_v7, 1 }
  0x80   :  { %88 = vmatpush.msra.mxu0 %v65_v19  ;;  %108 = vmatpush.msra.mxu1 %v66_v20  ;;  %v235_v19 = vperm.slane %v1081_v7, 0 }
  0x82   :  { %89 = vmatpush.msra.mxu0 %v47_v21  ;;  %109 = vmatpush.msra.mxu1 %v48_v22  ;;  %v216_v21 = vperm.slane %v1080_v8, 0 }
  0x84   :  { %90 = vmatpush.msra.mxu0 %v38_v25  ;;  %110 = vmatpush.msra.mxu1 %v39_v26 }
  0x85   :  { %1073 = vmatmul.msk.f32.vlgmr.msra.gmra.mxu0 %vm72_vm2, %v20_v2  ;;  %1074 = vmatmul.msk.f32.vlgmr.msra.gmra.mxu1 %vm72_vm2, %v20_v2  ;;  %v1082_v2 = vld [vmem:[%s1528_s2 + $0x10] ss:$8 sm:$0x3] }
  0x86   :  { %v254_v3 = vperm.slane %v1082_v2, 1  ;;  %v253_v15 = vperm.slane %v1082_v2, 0  ;;  %v1091_v2 = vld [vmem:[%s1528_s2 + $0x15] ss:$8 sm:$0x3] }
  0x87   :  { %v427_v8 = vperm.slane %v1091_v2, 0 }
 0x102   :  { %v92_v28 = vpop.f32.mrf.mxu0  ;;  %v112_v29 = vpop.f32.mrf.mxu1 }
 0x103   :  { %v93_v30 = vadd.f32 %v92_v28, %v70_v27  ;;  %v113_v31 = vadd.f32 %v112_v29, %v70_v27  ;;  %v308_v29 = vld [vmem:[%s1527_s1 + $0x18] sm:$0xff] }
 0x105   :  { %v115_v32 = vmax.f32 %v93_v30, 0.0  ;;  %v116_v33 = vmax.f32 %v113_v31, 0.0 }
 0x107   :  { %150 = vrot.lane.b32.xlu0 %v116_v33, %s1132_s18  ;;  %122 = vrot.lane.b32.xlu1 %v115_v32, %s1131_s17  ;;  %v144_v55 = vmul.f32 %v140_v44, %v115_v32  ;;  %v145_v56 = vmul.f32 %v141_v45, %v116_v33 }
 0x108   :  { %148 = vrot.lane.b32.xlu2 %v115_v32, %s1132_s18 }
 0x10f   :  { %165 = vperm.xlu0 %1129, %v117_v34  }
 0x110   :  { %124 = vrot.lane.b32.xlu2 %v116_v33, %s1131_s17  ;;  %v1087_v33 = vld [vmem:[%s1528_s2 + $0x13] ss:$8 sm:$0x3] }
 0x111   :  { %v349_v41 = vperm.slane %v1087_v33, 0 }
 0x117   :  { %261 = vperm.xlu0 %1129, %v1202_v35  }
 0x162   :  { %v149_v36 = vpop.permute.xlu2 %148 }
 0x16a   :  { %v125_v48 = vpop.permute.xlu2 %124 }
 0x179   :  { %v151_v42 = vpop.permute.xlu0 %150  ;;  %v123_v43 = vpop.permute.xlu1 %122 }
 0x17a   :  { %v152_v46 = vsel %vm55_vm0, %v149_v36, %v151_v42  ;;  %v155_v47 = vsel %vm55_vm0, %v151_v42, 0.0  ;;  %v126_v53 = vsel %vm28_vm1, %v123_v43, %v125_v48  ;;  %v129_v54 = vsel %vm28_vm1, 0.0, %v123_v43  ;;  %v1085_v42 = vld [vmem:[%s1528_s2 + $0x11] ss:$8 sm:$0x3] }
 0x17b   :  { %v161_v49 = vmul.f32 %v157_v39, %v152_v46  ;;  %v162_v50 = vmul.f32 %v158_v40, %v155_v47  ;;  %v135_v57 = vmul.f32 %v131_v51, %v129_v54  ;;  %v136_v58 = vmul.f32 %v132_v52, %v126_v53 }
 0x17c   :  { %v323_v48 = vperm.slane %v1085_v42, 0  ;;  %v324_v52 = vperm.slane %v1085_v42, 1 }
 0x17d   :  { %183 = vmatpush.msrb.mxu1 %v161_v49  ;;  %203 = vmatpush.msrb.mxu0 %v162_v50 }
 0x17f   :  { %184 = vmatpush.msrb.mxu1 %v144_v55  ;;  %204 = vmatpush.msrb.mxu0 %v145_v56 }
 0x181   :  { %185 = vmatpush.msrb.mxu1 %v135_v57  ;;  %205 = vmatpush.msrb.mxu0 %v136_v58  ;;  %v166_v59 = vpop.permute.xlu0 %165 }
 0x182   :  { %1078 = vmatmul.msk.f32.vlgmr.msrb.gmra.mxu1 %vm72_vm2, %v117_v34  ;;  %1079 = vmatmul.msk.f32.vlgmr.msrb.gmra.mxu0 %vm72_vm2, %v117_v34  ;;  %v1086_v34 = vld [vmem:[%s1528_s2 + $0x12] ss:$8 sm:$0x3] }
 0x183   :  { %v333_v37 = vperm.slane %v1086_v34, 1  ;;  %v332_v45 = vperm.slane %v1086_v34, 0 }
 0x189   :  { %v262_v25 = vpop.permute.xlu0 %261 }
 0x1ff   :  { %v187_v60 = vpop.f32.mrf.mxu1  ;;  %v207_v61 = vpop.f32.mrf.mxu0 }
 0x200   :  { %v188_v62 = vadd.f32 %v187_v60, %v166_v59  ;;  %v208_v63 = vadd.f32 %v207_v61, %v166_v59 }
 0x202   :  { %v210_v0 = vmax.f32 %v188_v62, 0.0  ;;  %v211_v1 = vmax.f32 %v208_v63, 0.0  ;;  %v404_v63 = vld [vmem:[%s1527_s1 + $0x20] sm:$0xff] }
 0x204   :  { %245 = vrot.lane.b32.xlu2 %v211_v1, %s1134_s12  ;;  %243 = vrot.lane.b32.xlu1 %v210_v0, %s1134_s12  ;;  %v221_v14 = vmul.f32 %v217_v11, %v211_v1  ;;  %v220_v24 = vmul.f32 %v216_v21, %v210_v0 }
 0x20c   :  { %228 = vrot.lane.b32.xlu2 %v211_v1, %s1132_s18  ;;  %226 = vrot.lane.b32.xlu1 %v210_v0, %s1132_s18  ;;  %v1092_v0 = vld [vmem:[%s1528_s2 + $0x16] ss:$8 sm:$0x3] }
 0x25e   :  { %v246_v4 = vpop.permute.xlu2 %245 }
 0x25f   :  { %v251_v5 = vsel %vm247_vm3, %v246_v4, 0.0 }
 0x260   :  { %v258_v6 = vmul.f32 %v254_v3, %v251_v5  ;;  %v444_v3 = vperm.slane %v1092_v0, 0  ;;  %v1090_v5 = vld [vmem:[%s1528_s2 + $0x14] ss:$8 sm:$0x3] }
 0x262   :  { %299 = vmatpush.msra.mxu1 %v258_v6 }
 0x266   :  { %v229_v10 = vpop.permute.xlu2 %228 }
 0x267   :  { %v233_v12 = vsel %vm55_vm0, %v229_v10, 0.0 }
 0x268   :  { %v240_v13 = vmul.f32 %v236_v9, %v233_v12  ;;  %v428_v9 = vperm.slane %v1091_v2, 1  ;;  %v418_v12 = vperm.slane %v1090_v5, 0 }
 0x26a   :  { %300 = vmatpush.msra.mxu1 %v240_v13 }
 0x26c   :  { %301 = vmatpush.msra.mxu1 %v221_v14 }
 0x26d   :  { %1084 = vmatmul.msk.f32.vlgmr.msra.gmra.mxu1 %vm72_vm2, %v1202_v35 }
 0x276   :  { %v244_v16 = vpop.permute.xlu1 %243 }
 0x277   :  { %v248_v17 = vsel %vm247_vm3, %v244_v16, %v246_v4  ;;  %v445_v4 = vperm.slane %v1092_v0, 1  ;;  %v1101_v0 = vld [vmem:[%s1528_s2 + $0x23] ss:$8 sm:$0x3] }
 0x278   :  { %v257_v18 = vmul.f32 %v253_v15, %v248_v17  ;;  %v419_v15 = vperm.slane %v1090_v5, 1 }
 0x27a   :  { %279 = vmatpush.msra.mxu0 %v257_v18 }
 0x27e   :  { %v227_v20 = vpop.permute.xlu1 %226 }
 0x27f   :  { %v230_v22 = vsel %vm55_vm0, %v227_v20, %v229_v10 }
 0x280   :  { %v239_v23 = vmul.f32 %v235_v19, %v230_v22 }
 0x282   :  { %280 = vmatpush.msra.mxu0 %v239_v23 }
 0x284   :  { %281 = vmatpush.msra.mxu0 %v220_v24 }
 0x285   :  { %1083 = vmatmul.msk.f32.vlgmr.msra.gmra.mxu0 %vm72_vm2, %v1202_v35  ;;  %v350_v35 = vperm.slane %v1087_v33, 1  ;;  %v1096_v33 = vld [vmem:[%s1528_s2 + $0x20] ss:$8 sm:$0x3] }
 0x2ea   :  { %v303_v26 = vpop.f32.mrf.mxu1 }
 0x2eb   :  { %v304_v27 = vadd.f32 %v303_v26, %v262_v25 }
 0x2ed   :  { %v307_v28 = vmax.f32 %v304_v27, 0.0 }
 0x2ef   :  { %342 = vrot.lane.b32.xlu2 %v307_v28, %s1134_s12  ;;  %v337_v40 = vmul.f32 %v333_v37, %v307_v28  ;;  %v1095_v37 = vld [vmem:[%s1528_s2 + $0x17] ss:$8 sm:$0x3] }
 0x2f7   :  { %357 = vperm.xlu2 %1128, %v308_v29  }
 0x302   :  { %v283_v30 = vpop.f32.mrf.mxu0 }
 0x303   :  { %v284_v31 = vadd.f32 %v283_v30, %v262_v25  ;;  %v499_v30 = vld [vmem:[%s1527_s1 + $0x28] sm:$0xff] }
 0x305   :  { %v306_v32 = vmax.f32 %v284_v31, 0.0 }
 0x307   :  { %313 = vrot.lane.b32.xlu0 %v306_v32, %s1135_s21  ;;  %340 = vrot.lane.b32.xlu1 %v306_v32, %s1134_s12  ;;  %v336_v50 = vmul.f32 %v332_v45, %v306_v32  ;;  %v1097_v32 = vld [vmem:[%s1528_s2 + $0x21] ss:$8 sm:$0x3] }
 0x30f   :  { %315 = vrot.lane.b32.xlu1 %v307_v28, %s1135_s21 }
 0x349   :  { %v343_v36 = vpop.permute.xlu2 %342 }
 0x34a   :  { %v347_v38 = vsel %vm247_vm3, %v343_v36, 0.0 }
 0x34b   :  { %v354_v39 = vmul.f32 %v350_v35, %v347_v38  ;;  %v540_v35 = vperm.slane %v1097_v32, 0 }
 0x34d   :  { %395 = vmatpush.msra.mxu3 %v354_v39 }
 0x34f   :  { %396 = vmatpush.msra.mxu3 %v337_v40  ;;  %v522_v40 = vperm.slane %v1096_v33, 0 }
 0x351   :  { %v358_v56 = vpop.permute.xlu2 %357 }
 0x379   :  { %v314_v43 = vpop.permute.xlu0 %313  ;;  %v341_v44 = vpop.permute.xlu1 %340 }
 0x37a   :  { %v344_v46 = vsel %vm247_vm3, %v341_v44, %v343_v36  ;;  %v321_v49 = vsel %vm317_vm4, 0.0, %v314_v43  ;;  %v541_v36 = vperm.slane %v1097_v32, 1 }
 0x37b   :  { %v353_v47 = vmul.f32 %v349_v41, %v344_v46  ;;  %v327_v51 = vmul.f32 %v323_v48, %v321_v49  ;;  %v523_v41 = vperm.slane %v1096_v33, 1  ;;  %v503_v48 = vperm.slane %v1095_v37, 0 }
 0x37c   :  { %v504_v49 = vperm.slane %v1095_v37, 1  ;;  %v707_v37 = vld [vmem:[%s1527_s1 + $0x40] sm:$0xff] }
 0x37d   :  { %375 = vmatpush.msra.mxu2 %v353_v47 }
 0x37f   :  { %376 = vmatpush.msra.mxu2 %v336_v50 }
 0x381   :  { %v316_v53 = vpop.permute.xlu1 %315  ;;  %377 = vmatpush.msra.mxu2 %v327_v51 }
 0x382   :  { %v318_v54 = vsel %vm317_vm4, %v314_v43, %v316_v53  ;;  %1088 = vmatmul.msk.f32.vlgmr.msra.gmra.mxu2 %vm72_vm2, %v308_v29 }
 0x383   :  { %v328_v55 = vmul.f32 %v324_v52, %v318_v54 }
 0x385   :  { %397 = vmatpush.msra.mxu3 %v328_v55 }
 0x386   :  { %1089 = vmatmul.msk.f32.vlgmr.msra.gmra.mxu3 %vm72_vm2, %v308_v29 }
 0x405   :  { %v379_v57 = vpop.f32.mrf.mxu2 }
 0x406   :  { %v380_v58 = vadd.f32 %v379_v57, %v358_v56 }
 0x408   :  { %v402_v59 = vmax.f32 %v380_v58, 0.0 }
 0x409   :  { %v399_v60 = vpop.f32.mrf.mxu3 }
 0x40a   :  { %v400_v61 = vadd.f32 %v399_v60, %v358_v56  ;;  %409 = vrot.lane.b32.xlu2 %v402_v59, %s1135_s21  ;;  %435 = vrot.lane.b32.xlu0 %v402_v59, %s1134_s12  ;;  %v431_v18 = vmul.f32 %v427_v8, %v402_v59  ;;  %v1100_v8 = vld [vmem:[%s1528_s2 + $0x22] ss:$8 sm:$0x3] }
 0x40c   :  { %v403_v62 = vmax.f32 %v400_v61, 0.0  ;;  %v596_v61 = vld [vmem:[%s1527_s1 + $0x38] sm:$0xff] }
 0x40e   :  { %437 = vrot.lane.b32.xlu1 %v403_v62, %s1134_s12  ;;  %v432_v19 = vmul.f32 %v428_v9, %v403_v62 }
 0x412   :  { %411 = vrot.lane.b32.xlu0 %v403_v62, %s1135_s21  ;;  %v595_v62 = vld [vmem:[%s1527_s1 + $0x30] sm:$0xff] }
 0x416   :  { %452 = vperm.xlu1 %1130, %v404_v63  }
 0x464   :  { %v410_v6 = vpop.permute.xlu2 %409 }
 0x465   :  { %v416_v16 = vsel %vm317_vm4, 0.0, %v410_v6 }
 0x466   :  { %v422_v21 = vmul.f32 %v418_v12, %v416_v16 }
 0x47c   :  { %v436_v1 = vpop.permute.xlu0 %435 }
 0x480   :  { %v438_v7 = vpop.permute.xlu1 %437 }
 0x481   :  { %v439_v10 = vsel %vm247_vm3, %v436_v1, %v438_v7  ;;  %v442_v11 = vsel %vm247_vm3, %v438_v7, 0.0 }
 0x482   :  { %v448_v13 = vmul.f32 %v444_v3, %v439_v10  ;;  %v449_v14 = vmul.f32 %v445_v4, %v442_v11  ;;  %v621_v3 = vperm.slane %v1101_v0, 1  ;;  %v620_v11 = vperm.slane %v1101_v0, 0 }
 0x484   :  { %470 = vmatpush.msrb.mxu0 %v448_v13  ;;  %490 = vmatpush.msrb.mxu1 %v449_v14  ;;  %v412_v17 = vpop.permute.xlu0 %411  ;;  %v611_v13 = vperm.slane %v1100_v8, 0 }
 0x485   :  { %v413_v20 = vsel %vm317_vm4, %v410_v6, %v412_v17 }
 0x486   :  { %v423_v22 = vmul.f32 %v419_v15, %v413_v20  ;;  %471 = vmatpush.msrb.mxu0 %v431_v18  ;;  %491 = vmatpush.msrb.mxu1 %v432_v19  ;;  %v612_v18 = vperm.slane %v1100_v8, 1 }
 0x488   :  { %472 = vmatpush.msrb.mxu0 %v422_v21  ;;  %492 = vmatpush.msrb.mxu1 %v423_v22  ;;  %v453_v23 = vpop.permute.xlu1 %452 }
 0x489   :  { %1093 = vmatmul.msk.f32.vlgmr.msrb.gmra.mxu0 %vm72_vm2, %v404_v63  ;;  %1094 = vmatmul.msk.f32.vlgmr.msrb.gmra.mxu1 %vm72_vm2, %v404_v63  ;;  %v1102_v63 = vld [vmem:[%s1528_s2 + $0x24] ss:$8 sm:$0x3] }
 0x48a   :  { %v638_v1 = vperm.slane %v1102_v63, 1  ;;  %v637_v7 = vperm.slane %v1102_v63, 0 }
 0x506   :  { %v474_v24 = vpop.f32.mrf.mxu0  ;;  %v494_v25 = vpop.f32.mrf.mxu1 }
 0x507   :  { %v475_v26 = vadd.f32 %v474_v24, %v453_v23  ;;  %v495_v27 = vadd.f32 %v494_v25, %v453_v23 }
 0x509   :  { %v497_v28 = vmax.f32 %v475_v26, 0.0  ;;  %v498_v29 = vmax.f32 %v495_v27, 0.0 }
 0x50b   :  { %532 = vrot.lane.b32.xlu0 %v498_v29, %s1136_s9  ;;  %513 = vrot.lane.b32.xlu1 %v497_v28, %s1134_s12  ;;  %v507_v52 = vmul.f32 %v503_v48, %v497_v28  ;;  %v508_v53 = vmul.f32 %v504_v49, %v498_v29  ;;  %v1108_v49 = vld [vmem:[%s1528_s2 + $0x26] ss:$8 sm:$0x3] }
 0x50c   :  { %530 = vrot.lane.b32.xlu2 %v497_v28, %s1136_s9 }
 0x513   :  { %548 = vperm.xlu0 %1129, %v499_v30  }
 0x514   :  { %515 = vrot.lane.b32.xlu2 %v498_v29, %s1134_s12  ;;  %s1137_s12 = smov 4  }
 0x566   :  { %v531_v31 = vpop.permute.xlu2 %530 }
 0x56e   :  { %v516_v34 = vpop.permute.xlu2 %515 }
 0x56f   :  { %v520_v42 = vsel %vm247_vm3, %v516_v34, 0.0 }
 0x570   :  { %v527_v51 = vmul.f32 %v523_v41, %v520_v42 }
 0x57d   :  { %v533_v38 = vpop.permute.xlu0 %532  ;;  %v514_v39 = vpop.permute.xlu1 %513 }
 0x57e   :  { %v535_v43 = vsel %vm534_vm5, %v531_v31, %v533_v38  ;;  %v538_v44 = vsel %vm534_vm5, %v533_v38, 0.0  ;;  %v517_v45 = vsel %vm247_vm3, %v514_v39, %v516_v34  ;;  %v1109_v38 = vld [vmem:[%s1528_s2 + $0x27] ss:$8 sm:$0x3] }
 0x57f   :  { %v544_v46 = vmul.f32 %v540_v35, %v535_v43  ;;  %v545_v47 = vmul.f32 %v541_v36, %v538_v44  ;;  %v526_v50 = vmul.f32 %v522_v40, %v517_v45  ;;  %v708_v36 = vld [vmem:[%s1527_s1 + $0x48] sm:$0xff]  ;;  %v771_v39 = vperm.slane %v1109_v38, 1 }
 0x580   :  { %v770_v43 = vperm.slane %v1109_v38, 0  ;;  %v1431_v38 = vld [vmem:[%s1528_s2 + $0x31] ss:$8 sm:$0x3] }
 0x581   :  { %566 = vmatpush.msrb.mxu2 %v544_v46  ;;  %586 = vmatpush.msrb.mxu3 %v545_v47 }
 0x583   :  { %567 = vmatpush.msrb.mxu2 %v526_v50  ;;  %587 = vmatpush.msrb.mxu3 %v527_v51  ;;  %v1107_v51 = vld [vmem:[%s1528_s2 + $0x25] ss:$8 sm:$0x3] }
 0x585   :  { %568 = vmatpush.msrb.mxu2 %v507_v52  ;;  %588 = vmatpush.msrb.mxu3 %v508_v53  ;;  %v549_v54 = vpop.permute.xlu0 %548 }
 0x586   :  { %1098 = vmatmul.msk.f32.vlgmr.msrb.gmra.mxu2 %vm72_vm2, %v499_v30  ;;  %1099 = vmatmul.msk.f32.vlgmr.msrb.gmra.mxu3 %vm72_vm2, %v499_v30 }
 0x609   :  { %v570_v55 = vpop.f32.mrf.mxu2  ;;  %v590_v56 = vpop.f32.mrf.mxu3 }
 0x60a   :  { %v571_v57 = vadd.f32 %v570_v55, %v549_v54  ;;  %v591_v58 = vadd.f32 %v590_v56, %v549_v54 }
 0x60c   :  { %v593_v59 = vmax.f32 %v571_v57, 0.0  ;;  %v594_v60 = vmax.f32 %v591_v58, 0.0  ;;  %v743_v57 = vperm.slane %v1108_v49, 0  ;;  %v744_v58 = vperm.slane %v1108_v49, 1 }
 0x60e   :  { %630 = vrot.lane.b32.xlu2 %v594_v60, %s1136_s9  ;;  %601 = vrot.lane.b32.xlu0 %v593_v59, %s1137_s12  ;;  %v625_v6 = vmul.f32 %v621_v3, %v594_v60  ;;  %v624_v16 = vmul.f32 %v620_v11, %v593_v59 }
 0x60f   :  { %628 = vrot.lane.b32.xlu1 %v593_v59, %s1136_s9  ;;  %v732_v59 = vperm.slane %v1107_v51, 0 }
 0x616   :  { %650 = vperm.xlu2 %1128, %v596_v61   ;;  %645 = vperm.xlu0 %1129, %v595_v62  }
 0x617   :  { %603 = vrot.lane.b32.xlu1 %v594_v60, %s1137_s12  ;;  %v733_v60 = vperm.slane %v1107_v51, 1 }
 0x668   :  { %v631_v2 = vpop.permute.xlu2 %630 }
 0x669   :  { %v635_v4 = vsel %vm534_vm5, %v631_v2, 0.0 }
 0x66a   :  { %v642_v5 = vmul.f32 %v638_v1, %v635_v4 }
 0x66c   :  { %693 = vmatpush.msra.mxu1 %v642_v5 }
 0x66e   :  { %694 = vmatpush.msra.mxu1 %v625_v6 }
 0x670   :  { %v651_v27 = vpop.permute.xlu2 %650 }
 0x680   :  { %v602_v9 = vpop.permute.xlu0 %601 }
 0x681   :  { %v629_v10 = vpop.permute.xlu1 %628  ;;  %v609_v15 = vsel %vm605_vm6, 0.0, %v602_v9 }
 0x682   :  { %v632_v12 = vsel %vm534_vm5, %v629_v10, %v631_v2  ;;  %v615_v17 = vmul.f32 %v611_v13, %v609_v15 }
 0x683   :  { %v641_v14 = vmul.f32 %v637_v7, %v632_v12 }
 0x685   :  { %670 = vmatpush.msra.mxu0 %v641_v14 }
 0x687   :  { %671 = vmatpush.msra.mxu0 %v624_v16 }
 0x688   :  { %v646_v22 = vpop.permute.xlu0 %645 }
 0x689   :  { %v604_v19 = vpop.permute.xlu1 %603  ;;  %672 = vmatpush.msra.mxu0 %v615_v17 }
 0x68a   :  { %v606_v20 = vsel %vm605_vm6, %v602_v9, %v604_v19  ;;  %1103 = vmatmul.msk.f32.vlgmr.msra.gmra.mxu0 %vm72_vm2, %v595_v62 }
 0x68b   :  { %v616_v21 = vmul.f32 %v612_v18, %v606_v20 }
 0x68d   :  { %695 = vmatpush.msra.mxu1 %v616_v21 }
 0x68e   :  { %1105 = vmatmul.msk.f32.vlgmr.msra.gmra.mxu1 %vm72_vm2, %v595_v62 }
 0x692   :  { %1104 = vmatmul.msk.f32.gmra.mxu0 %vm72_vm2, %v596_v61 }
 0x696   :  { %1106 = vmatmul.msk.f32.gmra.mxu1 %vm72_vm2, %v596_v61 }
 0x707   :  { %v674_v23 = vpop.f32.mrf.mxu0 }
 0x708   :  { %v675_v24 = vadd.f32 %v674_v23, %v646_v22 }
 0x70a   :  { %v703_v25 = vmax.f32 %v675_v24, 0.0 }
 0x70b   :  { %v697_v26 = vpop.f32.mrf.mxu1 }
 0x70c   :  { %753 = vrot.lane.b32.xlu0 %v703_v25, %s1136_s9  ;;  %v698_v33 = vadd.f32 %v697_v26, %v646_v22  ;;  %v747_v2 = vmul.f32 %v743_v57, %v703_v25  ;;  %v1396_v26 = vld [vmem:[%s1527_s1 + $0x58] sm:$0x1f] }
 0x70e   :  { %v704_v35 = vmax.f32 %v698_v33, 0.0  ;;  %v976_v33 = vld [vmem:[%s1529_s3 + $0x68] sm:$0xff] }
 0x70f   :  { %v677_v28 = vpop.f32.mrf.mxu0 }
 0x710   :  { %v678_v29 = vadd.f32 %v677_v28, %v651_v27  ;;  %v748_v1 = vmul.f32 %v744_v58, %v704_v35 }
 0x712   :  { %v705_v30 = vmax.f32 %v678_v29, 0.0  ;;  %v978_v29 = vld [vmem:[%s1529_s3 + $0x78] sm:$0xff] }
 0x713   :  { %v700_v31 = vpop.f32.mrf.mxu1 }
 0x714   :  { %v701_v32 = vadd.f32 %v700_v31, %v651_v27  ;;  %757 = vrot.lane.b32.xlu1 %v705_v30, %s1136_s9  ;;  %v749_v61 = vmul.f32 %v743_v57, %v705_v30  ;;  %v977_v31 = vld [vmem:[%s1529_s3 + $0x70] sm:$0xff] }
 0x716   :  { %v706_v34 = vmax.f32 %v701_v32, 0.0  ;;  %v993_v32 = vld [vmem:[%s1529_s3 + $0xf0] sm:$0xff] }
 0x718   :  { %759 = vrot.lane.b32.xlu2 %v706_v34, %s1136_s9  ;;  %721 = vrot.lane.b32.xlu0 %v706_v34, %s1137_s12  ;;  %v750_v62 = vmul.f32 %v744_v58, %v706_v34  ;;  %v992_v34 = vld [vmem:[%s1529_s3 + $0xe8] sm:$0xff] }
 0x719   :  { %v972_v58 = vld [vmem:[%s1529_s3 + $0x48] sm:$0xff] }
 0x71c   :  { %755 = vrot.lane.b32.xlu1 %v704_v35, %s1136_s9 }
 0x720   :  { %719 = vrot.lane.b32.xlu2 %v705_v30, %s1137_s12  ;;  %785 = vperm.xlu0 %1129, %v708_v36   ;;  %v994_v30 = vld [vmem:[%s1529_s3 + $0xf8] sm:$0xff] }
 0x724   :  { %715 = vrot.lane.b32.xlu1 %v703_v25, %s1137_s12  ;;  %v1386_v25 = vld [vmem:[%s1527_s1 + $0x50] sm:$0xff] }
 0x728   :  { %717 = vrot.lane.b32.xlu2 %v704_v35, %s1137_s12  ;;  %v1116_v35 = vld [vmem:[%s1528_s2 + $0x32] ss:$8 sm:$0x3] }
 0x72c   :  { %780 = vperm.xlu1 %1130, %v707_v37  }
 0x772   :  { %v760_v40 = vpop.permute.xlu2 %759 }
 0x773   :  { %v768_v41 = vsel %vm534_vm5, %v760_v40, 0.0 }
 0x774   :  { %v777_v42 = vmul.f32 %v771_v39, %v768_v41  ;;  %v907_v41 = vperm.slane %v1116_v35, 1 }
 0x776   :  { %826 = vmatpush.msra.mxu3 %v777_v42 }
 0x77a   :  { %v720_v48 = vpop.permute.xlu2 %719 }
 0x77b   :  { %v730_v63 = vsel %vm605_vm6, 0.0, %v720_v48 }
 0x77c   :  { %v738_v3 = vmul.f32 %v732_v59, %v730_v63  ;;  %v987_v63 = vld [vmem:[%s1529_s3 + $0xc0] sm:$0xff] }
 0x77e   :  { %v754_v46 = vpop.permute.xlu0 %753 }
 0x782   :  { %v718_v4 = vpop.permute.xlu2 %717 }
 0x786   :  { %v758_v44 = vpop.permute.xlu1 %757 }
 0x787   :  { %v762_v45 = vsel %vm534_vm5, %v758_v44, %v760_v40  ;;  %v990_v40 = vld [vmem:[%s1529_s3 + $0xd8] sm:$0xff] }
 0x788   :  { %v776_v47 = vmul.f32 %v770_v43, %v762_v45 }
 0x78a   :  { %803 = vmatpush.msra.mxu2 %v776_v47  ;;  %v722_v54 = vpop.permute.xlu0 %721 }
 0x78b   :  { %v724_v0 = vsel %vm605_vm6, %v720_v48, %v722_v54  ;;  %v989_v54 = vld [vmem:[%s1529_s3 + $0xd0] sm:$0xff] }
 0x78c   :  { %v739_v5 = vmul.f32 %v733_v60, %v724_v0 }
 0x78e   :  { %v756_v50 = vpop.permute.xlu1 %755 }
 0x78f   :  { %v761_v52 = vsel %vm534_vm5, %v754_v46, %v756_v50  ;;  %v767_v53 = vsel %vm534_vm5, %v756_v50, 0.0 }
 0x790   :  { %v774_v55 = vmul.f32 %v770_v43, %v761_v52  ;;  %v775_v56 = vmul.f32 %v771_v39, %v767_v53  ;;  %v974_v39 = vld [vmem:[%s1529_s3 + $0x58] sm:$0xff]  ;;  %v906_v43 = vperm.slane %v1116_v35, 0  ;;  %v879_v52 = vperm.slane %v1431_v38, 1  ;;  %v973_v53 = vld [vmem:[%s1529_s3 + $0x50] sm:$0xff] }
 0x792   :  { %804 = vmatpush.msra.mxu2 %v774_v55  ;;  %827 = vmatpush.msra.mxu3 %v775_v56  ;;  %v786_v18 = vpop.permute.xlu0 %785 }
 0x794   :  { %805 = vmatpush.msra.mxu2 %v749_v61  ;;  %828 = vmatpush.msra.mxu3 %v750_v62  ;;  %v878_v61 = vperm.slane %v1431_v38, 0  ;;  %v971_v62 = vld [vmem:[%s1529_s3 + $0x40] sm:$0xff] }
 0x796   :  { %829 = vmatpush.msra.mxu3 %v748_v1  ;;  %v716_v6 = vpop.permute.xlu1 %715  ;;  %806 = vmatpush.msra.mxu2 %v747_v2  ;;  %v970_v1 = vld [vmem:[%s1529_s3 + $0x38] sm:$0xff] }
 0x797   :  { %v723_v7 = vsel %vm605_vm6, %v716_v6, %v718_v4  ;;  %v729_v8 = vsel %vm605_vm6, 0.0, %v716_v6  ;;  %v986_v2 = vld [vmem:[%s1529_s3 + $0xb8] sm:$0xff]  ;;  %v985_v6 = vld [vmem:[%s1529_s3 + $0xb0] sm:$0xff] }
 0x798   :  { %v736_v9 = vmul.f32 %v732_v59, %v729_v8  ;;  %v737_v10 = vmul.f32 %v733_v60, %v723_v7  ;;  %807 = vmatpush.msra.mxu2 %v738_v3  ;;  %830 = vmatpush.msra.mxu3 %v739_v5  ;;  %v988_v59 = vld [vmem:[%s1529_s3 + $0xc8] sm:$0xff]  ;;  %v969_v5 = vld [vmem:[%s1529_s3 + $0x30] sm:$0xff] }
 0x799   :  { %v968_v7 = vld [vmem:[%s1529_s3 + $0x28] sm:$0xff] }
 0x79a   :  { %808 = vmatpush.msra.mxu2 %v736_v9  ;;  %831 = vmatpush.msra.mxu3 %v737_v10  ;;  %v984_v8 = vld [vmem:[%s1529_s3 + $0xa8] sm:$0xff]  ;;  %v967_v9 = vld [vmem:[%s1529_s3 + $0x20] sm:$0xff] }
 0x79b   :  { %1110 = vmatmul.msk.f32.vlgmr.msra.gmra.mxu2 %vm788_vm7, %v707_v37  ;;  %1112 = vmatmul.msk.f32.vlgmr.msra.gmra.mxu3 %vm788_vm7, %v707_v37  ;;  %v991_v37 = vld [vmem:[%s1529_s3 + $0xe0] sm:$0xff] }
 0x79c   :  { %995 = vmatpush.msrb.mxu2 %v978_v29  ;;  %1015 = vmatpush.msrb.mxu3 %v994_v30  ;;  %v983_v10 = vld [vmem:[%s1529_s3 + $0xa0] sm:$0xff] }
 0x79e   :  { %v781_v11 = vpop.permute.xlu1 %780  ;;  %996 = vmatpush.msrb.mxu2 %v977_v31  ;;  %1016 = vmatpush.msrb.mxu3 %v993_v32  ;;  %v979_v32 = vld [vmem:[%s1529_s3 + $0x80] sm:$0xff] }
 0x7a0   :  { %997 = vmatpush.msrb.mxu2 %v976_v33  ;;  %1017 = vmatpush.msrb.mxu3 %v992_v34 }
 0x7a2   :  { %1018 = vmatpush.msrb.mxu3 %v991_v37 }
 0x7a3   :  { %1111 = vmatmul.msk.f32.gmra.mxu2 %vm788_vm7, %v708_v36  ;;  %1113 = vmatmul.msk.f32.gmra.mxu3 %vm788_vm7, %v708_v36  ;;  %v975_v36 = vld [vmem:[%s1529_s3 + $0x60] sm:$0xff] }
 0x7a4   :  { %998 = vmatpush.msrb.mxu2 %v975_v36  ;;  %1019 = vmatpush.msrb.mxu3 %v990_v40 }
 0x7a6   :  { %999 = vmatpush.msrb.mxu2 %v974_v39  ;;  %1020 = vmatpush.msrb.mxu3 %v989_v54 }
 0x7a8   :  { %1000 = vmatpush.msrb.mxu2 %v973_v53  ;;  %1021 = vmatpush.msrb.mxu3 %v988_v59 }
 0x7aa   :  { %1001 = vmatpush.msrb.mxu2 %v972_v58  ;;  %1022 = vmatpush.msrb.mxu3 %v987_v63 }
 0x7ac   :  { %1002 = vmatpush.msrb.mxu2 %v971_v62  ;;  %1023 = vmatpush.msrb.mxu3 %v986_v2 }
 0x7ae   :  { %1003 = vmatpush.msrb.mxu2 %v970_v1  ;;  %1024 = vmatpush.msrb.mxu3 %v985_v6 }
 0x7b0   :  { %1004 = vmatpush.msrb.mxu2 %v969_v5  ;;  %1025 = vmatpush.msrb.mxu3 %v984_v8 }
 0x7b2   :  { %1005 = vmatpush.msrb.mxu2 %v968_v7  ;;  %1026 = vmatpush.msrb.mxu3 %v983_v10 }
 0x7b4   :  { %1006 = vmatpush.msrb.mxu2 %v967_v9 }
 0x81e   :  { %v810_v12 = vpop.f32.mrf.mxu2  ;;  %v833_v13 = vpop.f32.mrf.mxu3 }
 0x81f   :  { %v811_v14 = vadd.f32 %v810_v12, %v781_v11  ;;  %v834_v15 = vadd.f32 %v833_v13, %v781_v11  ;;  %v1114_v11 = vld [vmem:[%s1528_s2 + $0x30] ss:$8 sm:$0x3] }
 0x821   :  { %v1369_v16 = vmax.f32 %v811_v14, 0.0  ;;  %v1371_v17 = vmax.f32 %v834_v15, 0.0  ;;  %v966_v14 = vld [vmem:[%s1529_s3 + $0x18] sm:$0xff] }
 0x822   :  { %v982_v15 = vld [vmem:[%s1529_s3 + $0x98] sm:$0xff]  ;;  %1007 = vmatpush.msrb.mxu2 %v966_v14 }
 0x823   :  { %890 = vrot.lane.b32.xlu2 %v1371_v17, %s1138_s14  ;;  %888 = vrot.lane.b32.xlu1 %v1369_v16, %s1138_s14 }
 0x824   :  { %1027 = vmatpush.msrb.mxu3 %v982_v15 }
 0x826   :  { %v813_v19 = vpop.f32.mrf.mxu2  ;;  %v836_v20 = vpop.f32.mrf.mxu3 }
 0x827   :  { %v814_v21 = vadd.f32 %v813_v19, %v786_v18  ;;  %v837_v22 = vadd.f32 %v836_v20, %v786_v18 }
 0x829   :  { %v1375_v23 = vmax.f32 %v814_v21, 0.0  ;;  %v1377_v24 = vmax.f32 %v837_v22, 0.0  ;;  %v847_v22 = vperm.slane %v1114_v11, 0 }
 0x82b   :  { %894 = vrot.lane.b32.xlu0 %v1377_v24, %s1138_s14  ;;  %892 = vrot.lane.b32.xlu2 %v1375_v23, %s1138_s14  ;;  %v851_v30 = vmul.f32 %v847_v22, %v1369_v16 }
 0x82c   :  { %867 = vrot.lane.b32.xlu1 %v1377_v24, %s1136_s9 }
 0x833   :  { %865 = vrot.lane.b32.xlu0 %v1375_v23, %s1136_s9  ;;  %861 = vrot.lane.b32.xlu2 %v1369_v16, %s1136_s9  ;;  %v964_v16 = vld [vmem:[%s1529_s3 + $0x8] sm:$0xff] }
 0x834   :  { %916 = vperm.xlu1 %1130, %v1386_v25  }
 0x83b   :  { %863 = vrot.lane.b32.xlu0 %v1371_v17, %s1136_s9  ;;  %1038 = vperm.xlu2 %1128, %v1396_v26  }
 0x87d   :  { %v891_v27 = vpop.permute.xlu2 %890 }
 0x87e   :  { %v903_v45 = vsel %vm896_vm8, %v891_v27, 0.0 }
 0x87f   :  { %v911_v56 = vmul.f32 %v907_v41, %v903_v45 }
 0x885   :  { %v893_v42 = vpop.permute.xlu2 %892 }
 0x88d   :  { %v862_v12 = vpop.permute.xlu2 %861 }
 0x895   :  { %v889_v28 = vpop.permute.xlu1 %888 }
 0x896   :  { %v897_v46 = vsel %vm896_vm8, %v889_v28, %v891_v27  ;;  %v848_v27 = vperm.slane %v1114_v11, 1  ;;  %v853_v28 = vmul.f32 %v847_v22, %v1375_v23  ;;  %v965_v23 = vld [vmem:[%s1529_s3 + $0x10] sm:$0xff] }
 0x897   :  { %v910_v57 = vmul.f32 %v906_v43, %v897_v46  ;;  %1008 = vmatpush.msrb.mxu2 %v965_v23 }
 0x898   :  { %v854_v29 = vmul.f32 %v848_v27, %v1377_v24  ;;  %v852_v31 = vmul.f32 %v848_v27, %v1371_v17  ;;  %v981_v24 = vld [vmem:[%s1529_s3 + $0x90] sm:$0xff]  ;;  %v980_v17 = vld [vmem:[%s1529_s3 + $0x88] sm:$0xff] }
 0x899   :  { %1028 = vmatpush.msrb.mxu3 %v981_v24  ;;  %1009 = vmatpush.msrb.mxu2 %v964_v16 }
 0x89b   :  { %1029 = vmatpush.msrb.mxu3 %v980_v17 }
 0x89d   :  { %v895_v44 = vpop.permute.xlu0 %894  ;;  %1030 = vmatpush.msrb.mxu3 %v979_v32 }
 0x89e   :  { %v898_v47 = vsel %vm896_vm8, %v893_v42, %v895_v44  ;;  %v904_v48 = vsel %vm896_vm8, %v895_v44, 0.0  ;;  %v868_v49 = vpop.permute.xlu1 %867 }
 0x89f   :  { %v912_v50 = vmul.f32 %v906_v43, %v898_v47  ;;  %v913_v51 = vmul.f32 %v907_v41, %v904_v48  ;;  %v876_v55 = vsel %vm534_vm5, %v868_v49, 0.0  ;;  %v1039_v43 = vpop.permute.xlu2 %1038 }
 0x8a0   :  { %v885_v60 = vmul.f32 %v879_v52, %v876_v55 }
 0x8a1   :  { %931 = vmatpush.msrb.mxu0 %v912_v50  ;;  %951 = vmatpush.msrb.mxu1 %v913_v51 }
 0x8a3   :  { %932 = vmatpush.msrb.mxu0 %v910_v57  ;;  %952 = vmatpush.msrb.mxu1 %v911_v56 }
 0x8a5   :  { %v866_v0 = vpop.permute.xlu0 %865  ;;  %953 = vmatpush.msrb.mxu1 %v885_v60 }
 0x8a6   :  { %v870_v3 = vsel %vm534_vm5, %v866_v0, %v868_v49  ;;  %v917_v33 = vpop.permute.xlu1 %916 }
 0x8a7   :  { %v884_v4 = vmul.f32 %v878_v61, %v870_v3 }
 0x8a9   :  { %933 = vmatpush.msrb.mxu0 %v884_v4 }
 0x8ad   :  { %v864_v13 = vpop.permute.xlu0 %863 }
 0x8ae   :  { %v869_v18 = vsel %vm534_vm5, %v862_v12, %v864_v13  ;;  %v875_v19 = vsel %vm534_vm5, %v864_v13, 0.0 }
 0x8af   :  { %v882_v20 = vmul.f32 %v878_v61, %v869_v18  ;;  %v883_v21 = vmul.f32 %v879_v52, %v875_v19 }
 0x8b1   :  { %934 = vmatpush.msrb.mxu0 %v882_v20  ;;  %954 = vmatpush.msrb.mxu1 %v883_v21 }
 0x8b3   :  { %935 = vmatpush.msrb.mxu0 %v853_v28  ;;  %955 = vmatpush.msrb.mxu1 %v854_v29 }
 0x8b5   :  { %936 = vmatpush.msrb.mxu0 %v851_v30  ;;  %956 = vmatpush.msrb.mxu1 %v852_v31 }
 0x8b6   :  { %1117 = vmatmul.msk.f32.vlgmr.msrb.gmra.mxu0 %vm788_vm7, %v1386_v25  ;;  %1118 = vmatmul.msk.f32.vlgmr.msrb.gmra.mxu1 %vm788_vm7, %v1386_v25  ;;  %v963_v25 = vld [vmem:[%s1529_s3] sm:$0xff] }
 0x8b7   :  { %1010 = vmatpush.msrb.mxu2 %v963_v25 }
 0x933   :  { %v938_v34 = vpop.f32.mrf.mxu0  ;;  %v958_v35 = vpop.f32.mrf.mxu1 }
 0x934   :  { %v939_v36 = vadd.f32 %v938_v34, %v917_v33  ;;  %v959_v37 = vadd.f32 %v958_v35, %v917_v33 }
 0x936   :  { %v961_v38 = vmax.f32 %v939_v36, 0.0  ;;  %v962_v39 = vmax.f32 %v959_v37, 0.0 }
 0x938   :  { %1011 = vmatmul.f32.vlgmr.msrb.gmra.mxu2 %v961_v38  ;;  %1031 = vmatmul.f32.vlgmr.msrb.gmra.mxu3 %v962_v39 }
 0x9bb   :  { %v1012_v40 = vpop.f32.mrf.mxu2  ;;  %v1032_v41 = vpop.f32.mrf.mxu3 }
 0x9bc   :  { %v1033_v42 = vadd.f32 %v1032_v41, %v1012_v40 }
 0x9be   :  { %1059 = vmatpush.msra.mxu0 %v1033_v42 }
 0x9bf   :  { %1119 = vmatmul.msk.f32.vlgmr.msra.gmra.mxu0 %vm1041_vm9, %v1396_v26 }
 0xa3c   :  { %v1061_v44 = vpop.f32.mrf.mxu0 }
 0xa3d   :  { %v1062_v45 = vadd.f32 %v1061_v44, %v1039_v43 }
 0xa3f   :  { %1065 = vst.msk [vmem:[%s1530_s4] sm:$0x1f] %vm1064_vm10, %v1062_v45 }

</bundles_post_ra>
